<compile_context>
chip_gen: v7x
topology: tpu7x:2x2x1
jax: 0.10.0
libtpu: 0.0.40
codegen_flags: <defaults>
</compile_context>

<pallas_src>
import functools

import jax
import jax.numpy as jnp
from jax.experimental import pallas as pl
from jax.experimental.pallas import tpu as pltpu


def _round_up(a, b):
    return (a + b - 1) // b * b


def _make_altopt_kernel(c_out):
    def kernel(x_ref, w1_ref, b1_ref, w2_ref, b2_ref, o_ref):
        # x_ref:  (TM, C_in)   f32      w1_ref: (C_in, H)    bf16   b1_ref: (1, H)     f32
        # w2_ref: (H, C_pad)   bf16     b2_ref: (1, C_pad)   f32    o_ref:  (TM, C_out) f32
        x = x_ref[...].astype(jnp.bfloat16)          # in-kernel cast (free VPU work)

        # lin1 + ReLU (dropout is identity in eval mode); f32 accumulation on MXU.
        h = jnp.dot(x, w1_ref[...], preferred_element_type=jnp.float32) + b1_ref[...]
        h = jnp.maximum(h, 0.0)

        # lin2 (bf16 inputs, f32 accumulation). Padded columns of w2 are zero and
        # their f32 bias is -1e30 (added after f32 accumulation, never folded into
        # bf16), so padded logits vanish in the softmax below without inf-inf NaNs.
        z = jnp.dot(h.astype(w2_ref.dtype), w2_ref[...],
                    preferred_element_type=jnp.float32) + b2_ref[...]

        # softmax over the feature axis + clamp(min=1e-8), f32 on VPU/EUP.
        m = jnp.max(z, axis=-1, keepdims=True)
        e = jnp.exp(z - m)
        inv = pl.reciprocal(jnp.sum(e, axis=-1, keepdims=True), approx=True)
        p = jnp.maximum(e * inv, 1e-8)

        # Store only the real columns -> (TM, C_out) HBM writeback stays a single
        # contiguous linear DMA; the handful of masked vst per step is noise.
        o_ref[...] = p[:, :c_out].astype(o_ref.dtype)

    return kernel


def _choose_row_tile(n, block_rows):
    """>=4 grid steps when possible (v7x megacore + pipelining), >=512-row floor
    so the ~0.35us/step overhead stays amortized, capped at block_rows."""
    n8 = _round_up(max(n, 1), 8)
    tm = _round_up(max(-(-n // 4), 1), 8)      # ~cdiv(n, 4), rounded to sublanes
    tm = max(tm, 512)
    tm = min(tm, block_rows, n8)
    return tm


@functools.partial(jax.jit, static_argnames=("block_rows",))
def altopt_forward(x, w1_t, b1, w2_t, b2, *, block_rows=4096):
    """x: [N, C_in], w1_t: [C_in, H], b1: [1, H], w2_t: [H, C_out], b2: [1, C_out]."""
    n, c_in = x.shape
    hdim = w1_t.shape[1]
    c_out = w2_t.shape[1]

    # ---- lane-dense logit padding (C_out -> multiple of 128), weights only ---
    c_pad = _round_up(c_out, 128)
    if c_pad != c_out:
        w2_t = jnp.pad(w2_t, ((0, 0), (0, c_pad - c_out)))
        b2 = jnp.pad(b2, ((0, 0), (0, c_pad - c_out)), constant_values=-1e30)

    # ---- dtypes: bf16 matmul weights, f32 activations/biases/epilogue --------
    # (x stays f32 in HBM; cast happens inside the kernel.)
    w1_bf = w1_t.astype(jnp.bfloat16)
    w2_bf = w2_t.astype(jnp.bfloat16)
    b1_f = b1.astype(jnp.float32)
    b2_f = b2.astype(jnp.float32)

    # ---- row tiling: no row padding, partial last block handled by Pallas ----
    tm = _choose_row_tile(n, block_rows)
    grid = (pl.cdiv(n, tm),)

    # ---- VMEM budget (double-buffered x & out tiles + resident weights) ------
    vmem_need = (
        2 * tm * c_in * 4                        # x tile, f32, double-buffered
        + 2 * tm * c_out * 4                     # out tile, f32, double-buffered
        + 2 * (c_in * hdim + hdim * c_pad) * 2   # bf16 weights (default 2 bufs)
        + 2 * (hdim + c_pad) * 4                 # biases
        + tm * (hdim + 2 * c_pad) * 4            # h / z / p intermediates
    )
    # Conservative cap (48 MiB) keeps this safe on v7x's 64 MiB VMEM.
    vmem_limit = int(min(max(2 * vmem_need, 16 * 1024 * 1024), 48 * 1024 * 1024))

    cost = pl.CostEstimate(
        flops=2 * n * (c_in * hdim + hdim * c_pad),
        transcendentals=n * (c_pad + 1),        # exp + reciprocal
        bytes_accessed=n * c_in * 4 + n * c_out * 4
        + (c_in * hdim + hdim * c_pad) * 2 + (hdim + c_pad) * 4,
    )

    out = pl.pallas_call(
        _make_altopt_kernel(c_out),
        out_shape=jax.ShapeDtypeStruct((n, c_out), jnp.float32),
        grid_spec=pltpu.PrefetchScalarGridSpec(
            num_scalar_prefetch=0,
            grid=grid,
            in_specs=[
                pl.BlockSpec((tm, c_in), lambda i: (i, 0)),
                pl.BlockSpec((c_in, hdim), lambda i: (0, 0)),
                pl.BlockSpec((1, hdim), lambda i: (0, 0)),
                pl.BlockSpec((hdim, c_pad), lambda i: (0, 0)),
                pl.BlockSpec((1, c_pad), lambda i: (0, 0)),
            ],
            out_specs=pl.BlockSpec((tm, c_out), lambda i: (i, 0)),
        ),
        compiler_params=pltpu.CompilerParams(
            dimension_semantics=("parallel",),
            vmem_limit_bytes=vmem_limit,
        ),
        cost_estimate=cost,
    )(x, w1_bf, b1_f, w2_bf, b2_f)

    return out


def init_linear_params(key, in_features, out_features):
    """Deterministic init mimicking torch.nn.Linear.reset_parameters bounds."""
    k_w, k_b = jax.random.split(key)
    bound = 1.0 / (in_features ** 0.5)
    # store weight pre-transposed: [in_features, out_features]
    w_t = jax.random.uniform(
        k_w, (in_features, out_features), jnp.float32, -bound, bound
    )
    b = jax.random.uniform(k_b, (1, out_features), jnp.float32, -bound, bound)
    return w_t, b


def reference_forward(x, w1_t, b1, w2_t, b2):
    # f32 reference of ALTOPT.forward's dense path (eval mode).
    h = jnp.maximum(x @ w1_t + b1, 0.0)
    z = h @ w2_t + b2
    p = jax.nn.softmax(z, axis=1)
    return jnp.maximum(p, 1e-8)


if __name__ == "__main__":
    # Small shapes consistent with the module: N nodes, in/hidden/out channels.
    # N deliberately not a multiple of 8 (or of the row tile) to exercise the
    # partial-last-block path.
    N, C_IN, HIDDEN, C_OUT = 1000, 32, 64, 8

    key = jax.random.PRNGKey(0)
    k_x, k_l1, k_l2 = jax.random.split(key, 3)

    x = jax.random.normal(k_x, (N, C_IN), jnp.float32)
    w1_t, b1 = init_linear_params(k_l1, C_IN, HIDDEN)
    w2_t, b2 = init_linear_params(k_l2, HIDDEN, C_OUT)

    out = altopt_forward(x, w1_t, b1, w2_t, b2)
    out = jax.block_until_ready(out)

    ref = reference_forward(x, w1_t, b1, w2_t, b2)
    assert out.shape == (N, C_OUT)
    # bf16 matmul operands + approx reciprocal vs f32 reference -> loose tol on [0,1] probs.
    assert jnp.allclose(out, ref, atol=3e-2, rtol=3e-2), "mismatch vs reference"
    assert bool(jnp.all(out >= 1e-8)), "clamp(min=1e-8) violated"

    print("KERNEL_OK")
</pallas_src>

<mosaic_0001>
module attributes {stable_mosaic.version = 11 : i64} {
  func.func @kernel(%arg0: i32, %arg1: memref<512x32xf32, #tpu.memory_space<vmem>>, %arg2: memref<32x64xbf16, #tpu.memory_space<vmem>>, %arg3: memref<1x64xf32, #tpu.memory_space<vmem>>, %arg4: memref<64x128xbf16, #tpu.memory_space<vmem>>, %arg5: memref<1x128xf32, #tpu.memory_space<vmem>>, %arg6: memref<512x8xf32, #tpu.memory_space<vmem>>) attributes {dimension_semantics = [#tpu.dimension_semantics<parallel>], iteration_bounds = array<i64: 2>, scalar_prefetch = 0 : i64, scratch_operands = 0 : i64, tpu.core_type = #tpu.core_type<tc>, window_params = [{transform_indices = @transform_0, window_bounds = array<i64: 512, 32>}, {pipeline_mode = #tpu.pipeline_mode<synchronous>, transform_indices = @transform_1, window_bounds = array<i64: 32, 64>}, {pipeline_mode = #tpu.pipeline_mode<synchronous>, transform_indices = @transform_2, window_bounds = array<i64: 1, 64>}, {pipeline_mode = #tpu.pipeline_mode<synchronous>, transform_indices = @transform_3, window_bounds = array<i64: 64, 128>}, {pipeline_mode = #tpu.pipeline_mode<synchronous>, transform_indices = @transform_4, window_bounds = array<i64: 1, 128>}, {transform_indices = @transform_5, window_bounds = array<i64: 512, 8>}]} {
    %c0 = arith.constant 0 : index
    %c0_0 = arith.constant 0 : index
    %0 = vector.load %arg1[%c0, %c0_0] : memref<512x32xf32, #tpu.memory_space<vmem>>, vector<512x32xf32>
    %1 = arith.truncf %0 : vector<512x32xf32> to vector<512x32xbf16>
    %c0_1 = arith.constant 0 : index
    %c0_2 = arith.constant 0 : index
    %2 = vector.load %arg2[%c0_1, %c0_2] : memref<32x64xbf16, #tpu.memory_space<vmem>>, vector<32x64xbf16>
    %cst = arith.constant dense<0.000000e+00> : vector<512x64xf32>
    %3 = tpu.matmul %1, %2, %cst {dimension_numbers = #tpu.dot_dimension_numbers<[1], [0], [0], [1], [0, 0, 1, 1], [], []>} : vector<512x32xbf16>, vector<32x64xbf16>, vector<512x64xf32> -> vector<512x64xf32>
    %c0_3 = arith.constant 0 : index
    %c0_4 = arith.constant 0 : index
    %4 = vector.load %arg3[%c0_3, %c0_4] : memref<1x64xf32, #tpu.memory_space<vmem>>, vector<1x64xf32>
    %5 = vector.broadcast %4 : vector<1x64xf32> to vector<512x64xf32>
    %6 = arith.addf %3, %5 : vector<512x64xf32>
    %cst_5 = arith.constant 0.000000e+00 : f32
    %7 = vector.broadcast %cst_5 : f32 to vector<512x64xf32>
    %8 = arith.maximumf %6, %7 : vector<512x64xf32>
    %9 = arith.truncf %8 : vector<512x64xf32> to vector<512x64xbf16>
    %c0_6 = arith.constant 0 : index
    %c0_7 = arith.constant 0 : index
    %10 = vector.load %arg4[%c0_6, %c0_7] : memref<64x128xbf16, #tpu.memory_space<vmem>>, vector<64x128xbf16>
    %cst_8 = arith.constant dense<0.000000e+00> : vector<512x128xf32>
    %11 = tpu.matmul %9, %10, %cst_8 {dimension_numbers = #tpu.dot_dimension_numbers<[1], [0], [0], [1], [0, 0, 1, 1], [], []>} : vector<512x64xbf16>, vector<64x128xbf16>, vector<512x128xf32> -> vector<512x128xf32>
    %c0_9 = arith.constant 0 : index
    %c0_10 = arith.constant 0 : index
    %12 = vector.load %arg5[%c0_9, %c0_10] : memref<1x128xf32, #tpu.memory_space<vmem>>, vector<1x128xf32>
    %13 = vector.broadcast %12 : vector<1x128xf32> to vector<512x128xf32>
    %14 = arith.addf %11, %13 : vector<512x128xf32>
    %cst_11 = arith.constant dense<0xFF800000> : vector<512xf32>
    %15 = vector.multi_reduction <maximumf>, %14, %cst_11 [1] : vector<512x128xf32> to vector<512xf32>
    %16 = vector.shape_cast %15 : vector<512xf32> to vector<512x1xf32>
    %17 = vector.broadcast %16 : vector<512x1xf32> to vector<512x128xf32>
    %18 = arith.subf %14, %17 : vector<512x128xf32>
    %19 = math.exp %18 : vector<512x128xf32>
    %cst_12 = arith.constant dense<0.000000e+00> : vector<512xf32>
    %20 = vector.multi_reduction <add>, %19, %cst_12 [1] : vector<512x128xf32> to vector<512xf32>
    %21 = vector.shape_cast %20 : vector<512xf32> to vector<512x1xf32>
    %22 = tpu.reciprocal %21 {approx = true} : vector<512x1xf32> -> vector<512x1xf32>
    %23 = vector.broadcast %22 : vector<512x1xf32> to vector<512x128xf32>
    %24 = arith.mulf %19, %23 : vector<512x128xf32>
    %cst_13 = arith.constant 9.99999993E-9 : f32
    %25 = vector.broadcast %cst_13 : f32 to vector<512x128xf32>
    %26 = arith.maximumf %24, %25 : vector<512x128xf32>
    %27 = vector.extract_strided_slice %26 {offsets = [0, 0], sizes = [512, 8], strides = [1, 1]} : vector<512x128xf32> to vector<512x8xf32>
    %c0_14 = arith.constant 0 : index
    %c0_15 = arith.constant 0 : index
    %28 = vector.load %arg6[%c0_14, %c0_15] : memref<512x8xf32, #tpu.memory_space<vmem>>, vector<512x8xf32>
    tpu.vector_store %arg6[%c0_14, %c0_15], %27 {strides = array<i32>} : memref<512x8xf32, #tpu.memory_space<vmem>>, vector<512x8xf32>,
    return
  }
  func.func @transform_0(%arg0: i32) -> (i32, i32) {
    %c0_i32 = arith.constant 0 : i32
    %c0_i32_0 = arith.constant 0 : i32
    return %arg0, %c0_i32 : i32, i32
  }
  func.func @transform_1(%arg0: i32) -> (i32, i32) {
    %c0_i32 = arith.constant 0 : i32
    %c0_i32_0 = arith.constant 0 : i32
    %c0_i32_1 = arith.constant 0 : i32
    return %c0_i32, %c0_i32_0 : i32, i32
  }
  func.func @transform_2(%arg0: i32) -> (i32, i32) {
    %c0_i32 = arith.constant 0 : i32
    %c0_i32_0 = arith.constant 0 : i32
    %c0_i32_1 = arith.constant 0 : i32
    return %c0_i32, %c0_i32_0 : i32, i32
  }
  func.func @transform_3(%arg0: i32) -> (i32, i32) {
    %c0_i32 = arith.constant 0 : i32
    %c0_i32_0 = arith.constant 0 : i32
    %c0_i32_1 = arith.constant 0 : i32
    return %c0_i32, %c0_i32_0 : i32, i32
  }
  func.func @transform_4(%arg0: i32) -> (i32, i32) {
    %c0_i32 = arith.constant 0 : i32
    %c0_i32_0 = arith.constant 0 : i32
    %c0_i32_1 = arith.constant 0 : i32
    return %c0_i32, %c0_i32_0 : i32, i32
  }
  func.func @transform_5(%arg0: i32) -> (i32, i32) {
    %c0_i32 = arith.constant 0 : i32
    %c0_i32_0 = arith.constant 0 : i32
    return %arg0, %c0_i32 : i32, i32
  }
}

</mosaic_0001>

<bundles_post_ra>
// kernel: altopt_forward.1
= control target key start
LH: loop header
LB: loop body
LE: loop exit
PB: predicated region body
PF: predicated region fallthrough
CT: control target
= control target key end

     0   :  { %s3222_s18 = smov 0   ;;  %s3224_s19 = smov 0   ;;  %s4394_s0 = inlined_call_operand.vmem [shape: f32[1000,32], index: 0, kind: input, shape index: {}]   ;;  %s4395_s1 = inlined_call_operand.vmem [shape: bf16[32,64], index: 1, kind: input, shape index: {}]   ;;  %s4396_s2 = inlined_call_operand.vmem [shape: f32[1,64], index: 2, kind: input, shape index: {}]   ;;  %s4397_s3 = inlined_call_operand.vmem [shape: bf16[64,128], index: 3, kind: input, shape index: {}]   ;;  %s4398_s4 = inlined_call_operand.vmem [shape: f32[1,128], index: 4, kind: input, shape index: {}]   ;;  %s4399_s5 = inlined_call_operand.vmem [shape: f32[1000,8], index: 5, kind: output, shape index: {}]  }
   0x1   :  { %s3226_s20 = smov 0  }
   0x2 LB: > { %s3235_s21 = sadd.s32 4294967295, %s3158_s20   ;;  %s3237_s22 = sadd.s32 1, %s3158_s20   ;;  %s3158_s20 = sphi %s3226_s20, %s4486_s20   ;;  %s3154_s19 = sphi %s3224_s19, %s4485_s19   ;;  %s3150_s18 = sphi %s3222_s18, %s4484_s18  }
   0x3   : > { %s129_s23 = ssub.s32 %s3158_s20, %s3237_s22  ;;  %s132_s24 = sadd.s32 1, %s3154_s19 }
   0x4   : > { %p130_p0 = scmp.eq.s32.totalorder %s129_s23, 0  ;;  %p142_p1 = scmp.ne.s32.totalorder %s3154_s19, %s3150_s18 }
   0x5   : > { %p143_p2 = scmp.eq.s32.totalorder %s3235_s21, 1  ;;  %p2448_p3 = scmp.ge.s32.totalorder %s3158_s20, 1 }
   0x6   : > { %s3245_s25 = scalar_select %p130_p0, %s3154_s19, %s132_s24  }
   0x7   : > { %p3247_p4 = por %p143_p2, %p142_p1  ;;  %p196_p5 = scmp.lt.s32.totalorder %s3158_s20, 3 }
   0x9   : > { %p197_p6 = pnand %p2448_p3, %p196_p5 }
   0xb   : > { %200 = sbr.rel (%p197_p6) target bundleno = 982 (0x3d6), region = 40 }
  0x12   : > { %v2842_v0 = vld [vmem:[%s4395_s1] sm:$0xff]   ;;  %s3255_s29 = sshll.u32 %s3235_s21, 6  ;;  %v2843_v1 = vld [vmem:[%s4395_s1 + $0x8] sm:$0xff]   ;;  %vm366_vm0 = vcmask 261120   ;;  %vm887_vm1 = vcmask 523264   ;;  %s224_s6 = sand.u32 1, %s3150_s18  }
  0x13   : > { %p232_p7 = scmp.lt.s32.totalorder %s3255_s29, 124  ;;  %2614 = vmatprep.subr.bf16.mxu0 %v2842_v0  ;;  %v2844_v2 = vld [vmem:[%s4397_s3] sm:$0xff]   ;;  %v2845_v3 = vld [vmem:[%s4397_s3 + $0x8] sm:$0xff]   ;;  %vm1913_vm2 = vcmask 64512   ;;  %s1986_s18 = ssub.s32 (%p3247_p4), 125, %s3255_s29 }
  0x14   : > { %2615 = vmatpush3.bf16.msra.mxu0 %v2842_v0  ;;  %2682 = vmatprep.subr.bf16.mxu1 %v2844_v2  ;;  %s2541_s9 = sshll.u32 (%p3247_p4), %s3235_s21, 9  ;;  %p1987_p8 = scmp.lt.s32.totalorder (%p3247_p4), %s1986_s18, 64 }
  0x15   : > { %s233_s7 = scalar_select %p232_p7, %s3255_s29, 124  ;;  %2616 = vmatprep.subr.bf16.mxu0 %v2843_v1  ;;  %2683 = vmatpush3.bf16.msra.mxu1 %v2844_v2 }
  0x16   : > { %2684 = vmatprep.subr.bf16.mxu1 %v2845_v3 }
  0x17   : > { %s2451_s12 = sshll.u32 %s233_s7, 3  ;;  %s2449_s7 = sshll.u32 %s224_s6, 9 }
  0x18   : > { %s3271_s15 = scalar_lea.vmem %s4394_s0, %s2451_s12  ;;  %2617 = vmatpush3.bf16.msra.mxu0 %v2843_v1  ;;  %s3995_s8 = scalar_lea.vmem [#allocation2], %s2449_s7  }
  0x19   : > { %v247_v4 = vld [vmem:[%s3271_s15] sm:$0xff]  ;;  %v248_v5 = vld [vmem:[%s3271_s15 + $0x8] sm:$0xff]  ;;  %v249_v6 = vld [vmem:[%s3271_s15 + $0x10] sm:$0xff]  ;;  %2685 = vmatpush3.bf16.msra.mxu1 %v2845_v3  ;;  %s4195_s12 = scalar_lea.vmem (%p3247_p4), %s4399_s5, %s2541_s9  }
  0x1a   : > { %v311_v7 = vpack.c.bf16 %v248_v5, %v247_v4  ;;  %v250_v8 = vld [vmem:[%s3271_s15 + $0x18] sm:$0xff]  ;;  %v251_v9 = vld [vmem:[%s3271_s15 + $0x20] sm:$0xff]  ;;  %v252_v10 = vld [vmem:[%s3271_s15 + $0x28] sm:$0xff] }
  0x1b   : > { %v312_v11 = vpack.c.bf16 %v250_v8, %v249_v6  ;;  %v313_v12 = vpack.c.bf16 %v252_v10, %v251_v9  ;;  %v253_v13 = vld [vmem:[%s3271_s15 + $0x30] sm:$0xff]  ;;  %v254_v14 = vld [vmem:[%s3271_s15 + $0x38] sm:$0xff]  ;;  %v255_v15 = vld [vmem:[%s3271_s15 + $0x40] sm:$0xff] }
  0x1c   : > { %2618 = vmatprep.mubr.msk.bf16.mxu0 %vm366_vm0, %v311_v7  ;;  %v256_v16 = vld [vmem:[%s3271_s15 + $0x48] sm:$0xff]  ;;  %v314_v17 = vpack.c.bf16 %v254_v14, %v253_v13  ;;  %v257_v19 = vld [vmem:[%s3271_s15 + $0x50] sm:$0xff]  ;;  %v258_v20 = vld [vmem:[%s3271_s15 + $0x58] sm:$0xff] }
  0x1d   : > { %2619 = vmatmul.mubr.msk.bf16.vlgmr.msra.gmra.mrb[0].mxu0 %vm366_vm0, %v312_v11  ;;  %v315_v18 = vpack.c.bf16 %v256_v16, %v255_v15  ;;  %v259_v21 = vld [vmem:[%s3271_s15 + $0x60] sm:$0xff]  ;;  %v260_v22 = vld [vmem:[%s3271_s15 + $0x68] sm:$0xff]  ;;  %v316_v23 = vpack.c.bf16 %v258_v20, %v257_v19  ;;  %v261_v25 = vld [vmem:[%s3271_s15 + $0x70] sm:$0xff] }
  0x1e   : > { %2622 = vmatprep.mubr.msk.bf16.mxu0 %vm366_vm0, %v313_v12  ;;  %v317_v24 = vpack.c.bf16 %v260_v22, %v259_v21  ;;  %v262_v26 = vld [vmem:[%s3271_s15 + $0x78] sm:$0xff]  ;;  %v263_v27 = vld [vmem:[%s3271_s15 + $0x80] sm:$0xff]  ;;  %v264_v28 = vld [vmem:[%s3271_s15 + $0x88] sm:$0xff] }
  0x1f   : > { %v318_v29 = vpack.c.bf16 %v262_v26, %v261_v25  ;;  %v319_v30 = vpack.c.bf16 %v264_v28, %v263_v27  ;;  %v265_v31 = vld [vmem:[%s3271_s15 + $0x90] sm:$0xff]  ;;  %v266_v32 = vld [vmem:[%s3271_s15 + $0x98] sm:$0xff]  ;;  %v267_v33 = vld [vmem:[%s3271_s15 + $0xa0] sm:$0xff] }
  0x20   : > { %v268_v34 = vld [vmem:[%s3271_s15 + $0xa8] sm:$0xff]  ;;  %v320_v35 = vpack.c.bf16 %v266_v32, %v265_v31  ;;  %v269_v37 = vld [vmem:[%s3271_s15 + $0xb0] sm:$0xff]  ;;  %v270_v38 = vld [vmem:[%s3271_s15 + $0xb8] sm:$0xff] }
  0x21   : > { %v321_v36 = vpack.c.bf16 %v268_v34, %v267_v33  ;;  %v271_v39 = vld [vmem:[%s3271_s15 + $0xc0] sm:$0xff]  ;;  %v272_v40 = vld [vmem:[%s3271_s15 + $0xc8] sm:$0xff]  ;;  %v322_v41 = vpack.c.bf16 %v270_v38, %v269_v37  ;;  %v273_v43 = vld [vmem:[%s3271_s15 + $0xd0] sm:$0xff] }
  0x22   : > { %v323_v42 = vpack.c.bf16 %v272_v40, %v271_v39  ;;  %v274_v44 = vld [vmem:[%s3271_s15 + $0xd8] sm:$0xff]  ;;  %v275_v45 = vld [vmem:[%s3271_s15 + $0xe0] sm:$0xff]  ;;  %v276_v46 = vld [vmem:[%s3271_s15 + $0xe8] sm:$0xff] }
  0x23   : > { %v324_v47 = vpack.c.bf16 %v274_v44, %v273_v43  ;;  %v325_v48 = vpack.c.bf16 %v276_v46, %v275_v45  ;;  %v277_v49 = vld [vmem:[%s3271_s15 + $0xf0] sm:$0xff]  ;;  %v278_v50 = vld [vmem:[%s3271_s15 + $0xf8] sm:$0xff]  ;;  %v279_v51 = vld [vmem:[%s3271_s15 + $0x100] sm:$0xff] }
  0x24   : > { %v280_v52 = vld [vmem:[%s3271_s15 + $0x108] sm:$0xff]  ;;  %v326_v53 = vpack.c.bf16 %v278_v50, %v277_v49  ;;  %v281_v55 = vld [vmem:[%s3271_s15 + $0x110] sm:$0xff]  ;;  %v282_v56 = vld [vmem:[%s3271_s15 + $0x118] sm:$0xff] }
  0x25   : > { %2623 = vmatmul.mubr.msk.bf16.gmra.mrb[4].mxu0 %vm366_vm0, %v314_v17  ;;  %v327_v54 = vpack.c.bf16 %v280_v52, %v279_v51  ;;  %v283_v57 = vld [vmem:[%s3271_s15 + $0x120] sm:$0xff]  ;;  %v284_v58 = vld [vmem:[%s3271_s15 + $0x128] sm:$0xff]  ;;  %v328_v59 = vpack.c.bf16 %v282_v56, %v281_v55  ;;  %v285_v61 = vld [vmem:[%s3271_s15 + $0x130] sm:$0xff] }
  0x26   : > { %2626 = vmatprep.mubr.msk.bf16.mxu0 %vm366_vm0, %v315_v18  ;;  %v329_v60 = vpack.c.bf16 %v284_v58, %v283_v57  ;;  %v286_v62 = vld [vmem:[%s3271_s15 + $0x138] sm:$0xff]  ;;  %v287_v63 = vld [vmem:[%s3271_s15 + $0x140] sm:$0xff]  ;;  %v288_v0 = vld [vmem:[%s3271_s15 + $0x148] sm:$0xff] }
  0x27   : > { %v330_v1 = vpack.c.bf16 %v286_v62, %v285_v61  ;;  %v331_v2 = vpack.c.bf16 %v288_v0, %v287_v63  ;;  %v289_v3 = vld [vmem:[%s3271_s15 + $0x150] sm:$0xff]  ;;  %v290_v4 = vld [vmem:[%s3271_s15 + $0x158] sm:$0xff]  ;;  %v291_v5 = vld [vmem:[%s3271_s15 + $0x160] sm:$0xff] }
  0x28   : > { %v292_v6 = vld [vmem:[%s3271_s15 + $0x168] sm:$0xff]  ;;  %v332_v7 = vpack.c.bf16 %v290_v4, %v289_v3  ;;  %v293_v9 = vld [vmem:[%s3271_s15 + $0x170] sm:$0xff]  ;;  %v294_v10 = vld [vmem:[%s3271_s15 + $0x178] sm:$0xff] }
  0x29   : > { %v333_v8 = vpack.c.bf16 %v292_v6, %v291_v5  ;;  %v295_v11 = vld [vmem:[%s3271_s15 + $0x180] sm:$0xff]  ;;  %v296_v12 = vld [vmem:[%s3271_s15 + $0x188] sm:$0xff]  ;;  %v334_v13 = vpack.c.bf16 %v294_v10, %v293_v9  ;;  %v2846_v14 = vld [vmem:[%s4397_s3 + $0x10] sm:$0xff]  }
  0x2a   : > { %v335_v15 = vpack.c.bf16 %v296_v12, %v295_v11  ;;  %2686 = vmatprep.subr.bf16.mxu1 %v2846_v14  ;;  %v2847_v16 = vld [vmem:[%s4397_s3 + $0x18] sm:$0xff]   ;;  %v297_v17 = vld [vmem:[%s3271_s15 + $0x190] sm:$0xff]  ;;  %v299_v19 = vld [vmem:[%s3271_s15 + $0x1a0] sm:$0xff] }
  0x2b   : > { %2687 = vmatpush3.bf16.msra.mxu1 %v2846_v14  ;;  %v298_v18 = vld [vmem:[%s3271_s15 + $0x198] sm:$0xff]  ;;  %v300_v20 = vld [vmem:[%s3271_s15 + $0x1a8] sm:$0xff]  ;;  %v303_v25 = vld [vmem:[%s3271_s15 + $0x1c0] sm:$0xff] }
  0x2c   : > { %2688 = vmatprep.subr.bf16.mxu1 %v2847_v16  ;;  %v336_v21 = vpack.c.bf16 %v298_v18, %v297_v17  ;;  %v337_v22 = vpack.c.bf16 %v300_v20, %v299_v19  ;;  %v304_v26 = vld [vmem:[%s3271_s15 + $0x1c8] sm:$0xff]  ;;  %v307_v31 = vld [vmem:[%s3271_s15 + $0x1e0] sm:$0xff] }
  0x2d   : > { %2627 = vmatmul.mubr.msk.bf16.gmra.mrb[8].mxu0 %vm366_vm0, %v316_v23  ;;  %v301_v23 = vld [vmem:[%s3271_s15 + $0x1b0] sm:$0xff]  ;;  %v339_v28 = vpack.c.bf16 %v304_v26, %v303_v25  ;;  %v308_v32 = vld [vmem:[%s3271_s15 + $0x1e8] sm:$0xff]  ;;  %v3378_v38 = vld [vmem:[%s4396_s2] ss:$0 sm:$0xff] }
  0x2e   : > { %2630 = vmatprep.mubr.msk.bf16.mxu0 %vm366_vm0, %v317_v24  ;;  %v302_v24 = vld [vmem:[%s3271_s15 + $0x1b8] sm:$0xff]  ;;  %v341_v34 = vpack.c.bf16 %v308_v32, %v307_v31 }
  0x2f   : > { %2689 = vmatpush3.bf16.msra.mxu1 %v2847_v16  ;;  %v338_v27 = vpack.c.bf16 %v302_v24, %v301_v23 }
  0x35   : > { %2631 = vmatmul.mubr.msk.bf16.gmra.mrb[12].mxu0 %vm366_vm0, %v318_v29  ;;  %v305_v29 = vld [vmem:[%s3271_s15 + $0x1d0] sm:$0xff] }
  0x36   : > { %2634 = vmatprep.mubr.msk.bf16.mxu0 %vm366_vm0, %v319_v30  ;;  %v306_v30 = vld [vmem:[%s3271_s15 + $0x1d8] sm:$0xff] }
  0x37   : > { %v340_v33 = vpack.c.bf16 %v306_v30, %v305_v29 }
  0x3d   : > { %2635 = vmatmul.mubr.msk.bf16.gmra.mrb[16].mxu0 %vm366_vm0, %v320_v35  ;;  %v309_v35 = vld [vmem:[%s3271_s15 + $0x1f0] sm:$0xff] }
  0x3e   : > { %2638 = vmatprep.mubr.msk.bf16.mxu0 %vm366_vm0, %v321_v36  ;;  %v310_v36 = vld [vmem:[%s3271_s15 + $0x1f8] sm:$0xff] }
  0x3f   : > { %v342_v37 = vpack.c.bf16 %v310_v36, %v309_v35 }
  0x45   : > { %2639 = vmatmul.mubr.msk.bf16.gmra.mrb[20].mxu0 %vm366_vm0, %v322_v41 }
  0x46   : > { %2642 = vmatprep.mubr.msk.bf16.mxu0 %vm366_vm0, %v323_v42 }
  0x4d   : > { %2643 = vmatmul.mubr.msk.bf16.gmra.mrb[24].mxu0 %vm366_vm0, %v324_v47 }
  0x4e   : > { %2646 = vmatprep.mubr.msk.bf16.mxu0 %vm366_vm0, %v325_v48 }
  0x55   : > { %2647 = vmatmul.mubr.msk.bf16.gmra.mrb[28].mxu0 %vm366_vm0, %v326_v53 }
  0x56   : > { %2650 = vmatprep.mubr.msk.bf16.mxu0 %vm366_vm0, %v327_v54 }
  0x5d   : > { %2651 = vmatmul.mubr.msk.bf16.gmra.mrb[32].mxu0 %vm366_vm0, %v328_v59 }
  0x5e   : > { %2654 = vmatprep.mubr.msk.bf16.mxu0 %vm366_vm0, %v329_v60 }
  0x65   : > { %2655 = vmatmul.mubr.msk.bf16.gmra.mrb[36].mxu0 %vm366_vm0, %v330_v1 }
  0x66   : > { %2658 = vmatprep.mubr.msk.bf16.mxu0 %vm366_vm0, %v331_v2 }
  0x6d   : > { %2659 = vmatmul.mubr.msk.bf16.gmra.mrb[40].mxu0 %vm366_vm0, %v332_v7 }
  0x6e   : > { %2662 = vmatprep.mubr.msk.bf16.mxu0 %vm366_vm0, %v333_v8 }
  0x75   : > { %2663 = vmatmul.mubr.msk.bf16.gmra.mrb[44].mxu0 %vm366_vm0, %v334_v13 }
  0x76   : > { %2666 = vmatprep.mubr.msk.bf16.mxu0 %vm366_vm0, %v335_v15 }
  0x7d   : > { %2667 = vmatmul.mubr.msk.bf16.gmra.mrb[48].mxu0 %vm366_vm0, %v336_v21 }
  0x7e   : > { %2670 = vmatprep.mubr.msk.bf16.mxu0 %vm366_vm0, %v337_v22 }
  0x85   : > { %2671 = vmatmul.mubr.msk.bf16.gmra.mrb[52].mxu0 %vm366_vm0, %v338_v27 }
  0x86   : > { %2674 = vmatprep.mubr.msk.bf16.mxu0 %vm366_vm0, %v339_v28 }
  0x8d   : > { %2675 = vmatmul.mubr.msk.bf16.gmra.mrb[56].mxu0 %vm366_vm0, %v340_v33 }
  0x8e   : > { %2678 = vmatprep.mubr.msk.bf16.mxu0 %vm366_vm0, %v341_v34 }
  0x95   : > { %2679 = vmatmul.mubr.msk.bf16.gmra.mrb[60].mxu0 %vm366_vm0, %v342_v37 }
  0xf0   : > { %v2620_v39 = vpop.f32.mrb[0].mxu0 }
  0xf1   : > { %v506_v40 = vadd.f32 %v2620_v39, %v3378_v38  ;;  %v497_v41 = vpop.f32.mrb[1].mxu0 }
  0xf2   : > { %v498_v42 = vadd.f32 %v3378_v38, %v497_v41  ;;  %v2621_v43 = vpop.f32.mrb[2].mxu0 }
  0xf3   : > { %v509_v44 = vadd.f32 %v2621_v43, %v3378_v38  ;;  %v500_v45 = vpop.f32.mrb[3].mxu0  ;;  %v754_v47 = vmax.f32 %v506_v40, 0.0 }
  0xf4   : > { %v501_v46 = vadd.f32 %v3378_v38, %v500_v45  ;;  %v752_v49 = vmax.f32 %v498_v42, 0.0 }
  0xf5   : > { %v755_v48 = vmax.f32 %v509_v44, 0.0 }
  0xf6   : > { %v753_v50 = vmax.f32 %v501_v46, 0.0 }
  0xf7   : > { %v817_v51 = vpack.c.bf16 %v755_v48, %v754_v47 }
  0xf8   : > { %v2624_v52 = vpop.f32.mrb[4].mxu0  ;;  %v816_v53 = vpack.c.bf16 %v753_v50, %v752_v49 }
  0xf9   : > { %v522_v54 = vadd.f32 %v2624_v52, %v3378_v38  ;;  %v513_v55 = vpop.f32.mrb[5].mxu0 }
  0xfa   : > { %v514_v56 = vadd.f32 %v3378_v38, %v513_v55  ;;  %v2625_v57 = vpop.f32.mrb[6].mxu0  ;;  %2690 = vmatprep.mubr.msk.bf16.mxu1 %vm887_vm1, %v816_v53 }
  0xfb   : > { %v525_v58 = vadd.f32 %v2625_v57, %v3378_v38  ;;  %v516_v59 = vpop.f32.mrb[7].mxu0  ;;  %2691 = vmatmul.mubr.msk.bf16.vlgmr.msra.gmra.mrb[0].mxu1 %vm887_vm1, %v817_v51  ;;  %v758_v61 = vmax.f32 %v522_v54, 0.0 }
  0xfc   : > { %v517_v60 = vadd.f32 %v3378_v38, %v516_v59  ;;  %v756_v63 = vmax.f32 %v514_v56, 0.0 }
  0xfd   : > { %v759_v62 = vmax.f32 %v525_v58, 0.0 }
  0xfe   : > { %v757_v0 = vmax.f32 %v517_v60, 0.0 }
  0xff   : > { %v819_v1 = vpack.c.bf16 %v759_v62, %v758_v61 }
 0x100   : > { %v818_v2 = vpack.c.bf16 %v757_v0, %v756_v63  ;;  %v2628_v3 = vpop.f32.mrb[8].mxu0 }
 0x101   : > { %v538_v4 = vadd.f32 %v2628_v3, %v3378_v38  ;;  %v529_v5 = vpop.f32.mrb[9].mxu0 }
 0x102   : > { %v530_v6 = vadd.f32 %v3378_v38, %v529_v5  ;;  %v2629_v7 = vpop.f32.mrb[10].mxu0  ;;  %2694 = vmatprep.mubr.msk.bf16.mxu1 %vm887_vm1, %v818_v2 }
 0x103   : > { %v541_v8 = vadd.f32 %v2629_v7, %v3378_v38  ;;  %v532_v9 = vpop.f32.mrb[11].mxu0  ;;  %2695 = vmatmul.mubr.msk.bf16.gmra.mrb[4].mxu1 %vm887_vm1, %v819_v1  ;;  %v762_v11 = vmax.f32 %v538_v4, 0.0 }
 0x104   : > { %v533_v10 = vadd.f32 %v3378_v38, %v532_v9  ;;  %v760_v13 = vmax.f32 %v530_v6, 0.0 }
 0x105   : > { %v763_v12 = vmax.f32 %v541_v8, 0.0 }
 0x106   : > { %v761_v14 = vmax.f32 %v533_v10, 0.0 }
 0x107   : > { %v821_v15 = vpack.c.bf16 %v763_v12, %v762_v11 }
 0x108   : > { %v820_v16 = vpack.c.bf16 %v761_v14, %v760_v13  ;;  %v2632_v17 = vpop.f32.mrb[12].mxu0 }
 0x109   : > { %v554_v18 = vadd.f32 %v2632_v17, %v3378_v38  ;;  %v545_v19 = vpop.f32.mrb[13].mxu0 }
 0x10a   : > { %v546_v20 = vadd.f32 %v3378_v38, %v545_v19  ;;  %v2633_v21 = vpop.f32.mrb[14].mxu0  ;;  %2698 = vmatprep.mubr.msk.bf16.mxu1 %vm887_vm1, %v820_v16 }
 0x10b   : > { %v557_v22 = vadd.f32 %v2633_v21, %v3378_v38  ;;  %v548_v23 = vpop.f32.mrb[15].mxu0  ;;  %2699 = vmatmul.mubr.msk.bf16.gmra.mrb[8].mxu1 %vm887_vm1, %v821_v15  ;;  %v766_v25 = vmax.f32 %v554_v18, 0.0 }
 0x10c   : > { %v549_v24 = vadd.f32 %v3378_v38, %v548_v23  ;;  %v764_v27 = vmax.f32 %v546_v20, 0.0 }
 0x10d   : > { %v767_v26 = vmax.f32 %v557_v22, 0.0 }
 0x10e   : > { %v765_v28 = vmax.f32 %v549_v24, 0.0 }
 0x10f   : > { %v823_v29 = vpack.c.bf16 %v767_v26, %v766_v25 }
 0x110   : > { %v822_v30 = vpack.c.bf16 %v765_v28, %v764_v27  ;;  %v2636_v31 = vpop.f32.mrb[16].mxu0 }
 0x111   : > { %v570_v32 = vadd.f32 %v2636_v31, %v3378_v38  ;;  %v561_v33 = vpop.f32.mrb[17].mxu0 }
 0x112   : > { %v562_v34 = vadd.f32 %v3378_v38, %v561_v33  ;;  %v2637_v35 = vpop.f32.mrb[18].mxu0  ;;  %2702 = vmatprep.mubr.msk.bf16.mxu1 %vm887_vm1, %v822_v30 }
 0x113   : > { %v573_v36 = vadd.f32 %v2637_v35, %v3378_v38  ;;  %v564_v37 = vpop.f32.mrb[19].mxu0  ;;  %2703 = vmatmul.mubr.msk.bf16.gmra.mrb[12].mxu1 %vm887_vm1, %v823_v29  ;;  %v770_v40 = vmax.f32 %v570_v32, 0.0 }
 0x114   : > { %v565_v39 = vadd.f32 %v3378_v38, %v564_v37  ;;  %v768_v42 = vmax.f32 %v562_v34, 0.0 }
 0x115   : > { %v771_v41 = vmax.f32 %v573_v36, 0.0 }
 0x116   : > { %v769_v43 = vmax.f32 %v565_v39, 0.0 }
 0x117   : > { %v825_v44 = vpack.c.bf16 %v771_v41, %v770_v40 }
 0x118   : > { %v824_v45 = vpack.c.bf16 %v769_v43, %v768_v42  ;;  %v2640_v46 = vpop.f32.mrb[20].mxu0 }
 0x119   : > { %v586_v47 = vadd.f32 %v2640_v46, %v3378_v38  ;;  %v577_v48 = vpop.f32.mrb[21].mxu0 }
 0x11a   : > { %v578_v49 = vadd.f32 %v3378_v38, %v577_v48  ;;  %v2641_v50 = vpop.f32.mrb[22].mxu0  ;;  %2706 = vmatprep.mubr.msk.bf16.mxu1 %vm887_vm1, %v824_v45 }
 0x11b   : > { %v589_v51 = vadd.f32 %v2641_v50, %v3378_v38  ;;  %v580_v52 = vpop.f32.mrb[23].mxu0  ;;  %2707 = vmatmul.mubr.msk.bf16.gmra.mrb[16].mxu1 %vm887_vm1, %v825_v44  ;;  %v774_v54 = vmax.f32 %v586_v47, 0.0 }
 0x11c   : > { %v581_v53 = vadd.f32 %v3378_v38, %v580_v52  ;;  %v772_v56 = vmax.f32 %v578_v49, 0.0 }
 0x11d   : > { %v775_v55 = vmax.f32 %v589_v51, 0.0 }
 0x11e   : > { %v773_v57 = vmax.f32 %v581_v53, 0.0 }
 0x11f   : > { %v827_v58 = vpack.c.bf16 %v775_v55, %v774_v54 }
 0x120   : > { %v826_v59 = vpack.c.bf16 %v773_v57, %v772_v56  ;;  %v2644_v60 = vpop.f32.mrb[24].mxu0 }
 0x121   : > { %v602_v61 = vadd.f32 %v2644_v60, %v3378_v38  ;;  %v593_v62 = vpop.f32.mrb[25].mxu0 }
 0x122   : > { %v594_v63 = vadd.f32 %v3378_v38, %v593_v62  ;;  %v2645_v0 = vpop.f32.mrb[26].mxu0  ;;  %2710 = vmatprep.mubr.msk.bf16.mxu1 %vm887_vm1, %v826_v59 }
 0x123   : > { %v605_v1 = vadd.f32 %v2645_v0, %v3378_v38  ;;  %v596_v2 = vpop.f32.mrb[27].mxu0  ;;  %2711 = vmatmul.mubr.msk.bf16.gmra.mrb[20].mxu1 %vm887_vm1, %v827_v58  ;;  %v778_v4 = vmax.f32 %v602_v61, 0.0 }
 0x124   : > { %v597_v3 = vadd.f32 %v3378_v38, %v596_v2  ;;  %v776_v6 = vmax.f32 %v594_v63, 0.0 }
 0x125   : > { %v779_v5 = vmax.f32 %v605_v1, 0.0 }
 0x126   : > { %v777_v7 = vmax.f32 %v597_v3, 0.0 }
 0x127   : > { %v829_v8 = vpack.c.bf16 %v779_v5, %v778_v4 }
 0x128   : > { %v828_v9 = vpack.c.bf16 %v777_v7, %v776_v6  ;;  %v2648_v10 = vpop.f32.mrb[28].mxu0 }
 0x129   : > { %v618_v11 = vadd.f32 %v2648_v10, %v3378_v38  ;;  %v609_v12 = vpop.f32.mrb[29].mxu0 }
 0x12a   : > { %v610_v13 = vadd.f32 %v3378_v38, %v609_v12  ;;  %v2649_v14 = vpop.f32.mrb[30].mxu0  ;;  %2714 = vmatprep.mubr.msk.bf16.mxu1 %vm887_vm1, %v828_v9 }
 0x12b   : > { %v621_v15 = vadd.f32 %v2649_v14, %v3378_v38  ;;  %v612_v16 = vpop.f32.mrb[31].mxu0  ;;  %2715 = vmatmul.mubr.msk.bf16.gmra.mrb[24].mxu1 %vm887_vm1, %v829_v8  ;;  %v782_v18 = vmax.f32 %v618_v11, 0.0 }
 0x12c   : > { %v613_v17 = vadd.f32 %v3378_v38, %v612_v16  ;;  %v780_v20 = vmax.f32 %v610_v13, 0.0 }
 0x12d   : > { %v783_v19 = vmax.f32 %v621_v15, 0.0 }
 0x12e   : > { %v781_v21 = vmax.f32 %v613_v17, 0.0 }
 0x12f   : > { %v831_v22 = vpack.c.bf16 %v783_v19, %v782_v18 }
 0x130   : > { %v830_v23 = vpack.c.bf16 %v781_v21, %v780_v20  ;;  %v2652_v24 = vpop.f32.mrb[32].mxu0 }
 0x131   : > { %v634_v25 = vadd.f32 %v2652_v24, %v3378_v38  ;;  %v625_v26 = vpop.f32.mrb[33].mxu0 }
 0x132   : > { %v626_v27 = vadd.f32 %v3378_v38, %v625_v26  ;;  %v2653_v28 = vpop.f32.mrb[34].mxu0  ;;  %2718 = vmatprep.mubr.msk.bf16.mxu1 %vm887_vm1, %v830_v23 }
 0x133   : > { %v637_v29 = vadd.f32 %v2653_v28, %v3378_v38  ;;  %v628_v30 = vpop.f32.mrb[35].mxu0  ;;  %2719 = vmatmul.mubr.msk.bf16.gmra.mrb[28].mxu1 %vm887_vm1, %v831_v22  ;;  %v786_v32 = vmax.f32 %v634_v25, 0.0 }
 0x134   : > { %v629_v31 = vadd.f32 %v3378_v38, %v628_v30  ;;  %v784_v34 = vmax.f32 %v626_v27, 0.0 }
 0x135   : > { %v787_v33 = vmax.f32 %v637_v29, 0.0 }
 0x136   : > { %v785_v35 = vmax.f32 %v629_v31, 0.0 }
 0x137   : > { %v833_v36 = vpack.c.bf16 %v787_v33, %v786_v32 }
 0x138   : > { %v832_v37 = vpack.c.bf16 %v785_v35, %v784_v34  ;;  %v2656_v39 = vpop.f32.mrb[36].mxu0 }
 0x139   : > { %v650_v40 = vadd.f32 %v2656_v39, %v3378_v38  ;;  %v641_v41 = vpop.f32.mrb[37].mxu0 }
 0x13a   : > { %v642_v42 = vadd.f32 %v3378_v38, %v641_v41  ;;  %v2657_v43 = vpop.f32.mrb[38].mxu0  ;;  %2722 = vmatprep.mubr.msk.bf16.mxu1 %vm887_vm1, %v832_v37 }
 0x13b   : > { %v653_v44 = vadd.f32 %v2657_v43, %v3378_v38  ;;  %v644_v45 = vpop.f32.mrb[39].mxu0  ;;  %2723 = vmatmul.mubr.msk.bf16.gmra.mrb[32].mxu1 %vm887_vm1, %v833_v36  ;;  %v790_v47 = vmax.f32 %v650_v40, 0.0 }
 0x13c   : > { %v645_v46 = vadd.f32 %v3378_v38, %v644_v45  ;;  %v788_v49 = vmax.f32 %v642_v42, 0.0 }
 0x13d   : > { %v791_v48 = vmax.f32 %v653_v44, 0.0 }
 0x13e   : > { %v789_v50 = vmax.f32 %v645_v46, 0.0 }
 0x13f   : > { %v835_v51 = vpack.c.bf16 %v791_v48, %v790_v47 }
 0x140   : > { %v834_v52 = vpack.c.bf16 %v789_v50, %v788_v49  ;;  %v2660_v53 = vpop.f32.mrb[40].mxu0 }
 0x141   : > { %v666_v54 = vadd.f32 %v2660_v53, %v3378_v38  ;;  %v657_v55 = vpop.f32.mrb[41].mxu0 }
 0x142   : > { %v658_v56 = vadd.f32 %v3378_v38, %v657_v55  ;;  %v2661_v57 = vpop.f32.mrb[42].mxu0  ;;  %2726 = vmatprep.mubr.msk.bf16.mxu1 %vm887_vm1, %v834_v52 }
 0x143   : > { %v669_v58 = vadd.f32 %v2661_v57, %v3378_v38  ;;  %v660_v59 = vpop.f32.mrb[43].mxu0  ;;  %2727 = vmatmul.mubr.msk.bf16.gmra.mrb[36].mxu1 %vm887_vm1, %v835_v51  ;;  %v794_v61 = vmax.f32 %v666_v54, 0.0 }
 0x144   : > { %v661_v60 = vadd.f32 %v3378_v38, %v660_v59  ;;  %v792_v63 = vmax.f32 %v658_v56, 0.0 }
 0x145   : > { %v795_v62 = vmax.f32 %v669_v58, 0.0 }
 0x146   : > { %v793_v0 = vmax.f32 %v661_v60, 0.0 }
 0x147   : > { %v837_v1 = vpack.c.bf16 %v795_v62, %v794_v61 }
 0x148   : > { %v836_v2 = vpack.c.bf16 %v793_v0, %v792_v63  ;;  %v2664_v3 = vpop.f32.mrb[44].mxu0 }
 0x149   : > { %v682_v4 = vadd.f32 %v2664_v3, %v3378_v38  ;;  %v673_v5 = vpop.f32.mrb[45].mxu0 }
 0x14a   : > { %v674_v6 = vadd.f32 %v3378_v38, %v673_v5  ;;  %v2665_v7 = vpop.f32.mrb[46].mxu0  ;;  %2730 = vmatprep.mubr.msk.bf16.mxu1 %vm887_vm1, %v836_v2 }
 0x14b   : > { %v685_v8 = vadd.f32 %v2665_v7, %v3378_v38  ;;  %v676_v9 = vpop.f32.mrb[47].mxu0  ;;  %2731 = vmatmul.mubr.msk.bf16.gmra.mrb[40].mxu1 %vm887_vm1, %v837_v1  ;;  %v798_v11 = vmax.f32 %v682_v4, 0.0 }
 0x14c   : > { %v677_v10 = vadd.f32 %v3378_v38, %v676_v9  ;;  %v796_v13 = vmax.f32 %v674_v6, 0.0 }
 0x14d   : > { %v799_v12 = vmax.f32 %v685_v8, 0.0 }
 0x14e   : > { %v797_v14 = vmax.f32 %v677_v10, 0.0  ;;  %v3479_v10 = vld [vmem:[%s4398_s4] ss:$0 sm:$0xff] }
 0x14f   : > { %v839_v15 = vpack.c.bf16 %v799_v12, %v798_v11 }
 0x150   : > { %v838_v16 = vpack.c.bf16 %v797_v14, %v796_v13  ;;  %v2668_v17 = vpop.f32.mrb[48].mxu0 }
 0x151   : > { %v698_v18 = vadd.f32 %v2668_v17, %v3378_v38  ;;  %v689_v19 = vpop.f32.mrb[49].mxu0 }
 0x152   : > { %v690_v20 = vadd.f32 %v3378_v38, %v689_v19  ;;  %v2669_v21 = vpop.f32.mrb[50].mxu0  ;;  %2734 = vmatprep.mubr.msk.bf16.mxu1 %vm887_vm1, %v838_v16 }
 0x153   : > { %v701_v22 = vadd.f32 %v2669_v21, %v3378_v38  ;;  %v692_v23 = vpop.f32.mrb[51].mxu0  ;;  %2735 = vmatmul.mubr.msk.bf16.gmra.mrb[44].mxu1 %vm887_vm1, %v839_v15  ;;  %v802_v25 = vmax.f32 %v698_v18, 0.0 }
 0x154   : > { %v693_v24 = vadd.f32 %v3378_v38, %v692_v23  ;;  %v800_v27 = vmax.f32 %v690_v20, 0.0 }
 0x155   : > { %v803_v26 = vmax.f32 %v701_v22, 0.0 }
 0x156   : > { %v801_v28 = vmax.f32 %v693_v24, 0.0 }
 0x157   : > { %v841_v29 = vpack.c.bf16 %v803_v26, %v802_v25 }
 0x158   : > { %v840_v30 = vpack.c.bf16 %v801_v28, %v800_v27  ;;  %v2672_v31 = vpop.f32.mrb[52].mxu0 }
 0x159   : > { %v714_v32 = vadd.f32 %v2672_v31, %v3378_v38  ;;  %v705_v33 = vpop.f32.mrb[53].mxu0 }
 0x15a   : > { %v706_v34 = vadd.f32 %v3378_v38, %v705_v33  ;;  %v2673_v35 = vpop.f32.mrb[54].mxu0  ;;  %2738 = vmatprep.mubr.msk.bf16.mxu1 %vm887_vm1, %v840_v30 }
 0x15b   : > { %v717_v36 = vadd.f32 %v2673_v35, %v3378_v38  ;;  %v708_v37 = vpop.f32.mrb[55].mxu0  ;;  %2739 = vmatmul.mubr.msk.bf16.gmra.mrb[48].mxu1 %vm887_vm1, %v841_v29  ;;  %v806_v40 = vmax.f32 %v714_v32, 0.0 }
 0x15c   : > { %v709_v39 = vadd.f32 %v3378_v38, %v708_v37  ;;  %v804_v42 = vmax.f32 %v706_v34, 0.0 }
 0x15d   : > { %v807_v41 = vmax.f32 %v717_v36, 0.0 }
 0x15e   : > { %v805_v43 = vmax.f32 %v709_v39, 0.0 }
 0x15f   : > { %v843_v44 = vpack.c.bf16 %v807_v41, %v806_v40 }
 0x160   : > { %v842_v45 = vpack.c.bf16 %v805_v43, %v804_v42  ;;  %v2676_v46 = vpop.f32.mrb[56].mxu0 }
 0x161   : > { %v730_v47 = vadd.f32 %v2676_v46, %v3378_v38  ;;  %v721_v48 = vpop.f32.mrb[57].mxu0 }
 0x162   : > { %v722_v49 = vadd.f32 %v3378_v38, %v721_v48  ;;  %v2677_v50 = vpop.f32.mrb[58].mxu0  ;;  %2742 = vmatprep.mubr.msk.bf16.mxu1 %vm887_vm1, %v842_v45 }
 0x163   : > { %v733_v51 = vadd.f32 %v2677_v50, %v3378_v38  ;;  %v724_v52 = vpop.f32.mrb[59].mxu0  ;;  %2743 = vmatmul.mubr.msk.bf16.gmra.mrb[52].mxu1 %vm887_vm1, %v843_v44  ;;  %v810_v54 = vmax.f32 %v730_v47, 0.0 }
 0x164   : > { %v725_v53 = vadd.f32 %v3378_v38, %v724_v52  ;;  %v808_v56 = vmax.f32 %v722_v49, 0.0 }
 0x165   : > { %v811_v55 = vmax.f32 %v733_v51, 0.0 }
 0x166   : > { %v809_v57 = vmax.f32 %v725_v53, 0.0 }
 0x167   : > { %v845_v58 = vpack.c.bf16 %v811_v55, %v810_v54 }
 0x168   : > { %v844_v59 = vpack.c.bf16 %v809_v57, %v808_v56  ;;  %v2680_v60 = vpop.f32.mrb[60].mxu0 }
 0x169   : > { %v746_v61 = vadd.f32 %v2680_v60, %v3378_v38  ;;  %v737_v62 = vpop.f32.mrb[61].mxu0 }
 0x16a   : > { %v738_v63 = vadd.f32 %v3378_v38, %v737_v62  ;;  %v2681_v0 = vpop.f32.mrb[62].mxu0  ;;  %2746 = vmatprep.mubr.msk.bf16.mxu1 %vm887_vm1, %v844_v59 }
 0x16b   : > { %v749_v1 = vadd.f32 %v2681_v0, %v3378_v38  ;;  %v740_v2 = vpop.f32.mrb[63].mxu0  ;;  %2747 = vmatmul.mubr.msk.bf16.gmra.mrb[56].mxu1 %vm887_vm1, %v845_v58  ;;  %v814_v4 = vmax.f32 %v746_v61, 0.0 }
 0x16c   : > { %v741_v3 = vadd.f32 %v3378_v38, %v740_v2  ;;  %v812_v6 = vmax.f32 %v738_v63, 0.0 }
 0x16d   : > { %v815_v5 = vmax.f32 %v749_v1, 0.0 }
 0x16e   : > { %v813_v7 = vmax.f32 %v741_v3, 0.0 }
 0x16f   : > { %v847_v8 = vpack.c.bf16 %v815_v5, %v814_v4 }
 0x170   : > { %v846_v9 = vpack.c.bf16 %v813_v7, %v812_v6 }
 0x172   : > { %2750 = vmatprep.mubr.msk.bf16.mxu1 %vm887_vm1, %v846_v9 }
 0x173   : > { %2751 = vmatmul.mubr.msk.bf16.gmra.mrb[60].mxu1 %vm887_vm1, %v847_v8 }
 0x1ce   : > { %v2692_v11 = vpop.f32.mrb[0].mxu1 }
 0x1cf   : > { %v3482_v12 = vadd.f32 %v2692_v11, %v3479_v10  ;;  %v1018_v38 = vpop.f32.mrb[1].mxu1 }
 0x1d0   : > { %v3485_v13 = vadd.f32 %v3479_v10, %v1018_v38  ;;  %v2693_v14 = vpop.f32.mrb[2].mxu1 }
 0x1d1   : > { %1277 = vmax.xlane.f32.xlu1 %v3482_v12  ;;  %v1021_v15 = vpop.f32.mrb[3].mxu1  ;;  %v3490_v16 = vadd.f32 %v2693_v14, %v3479_v10 }
 0x1d2   : > { %1273 = vmax.xlane.f32.xlu0 %v3485_v13  ;;  %v3493_v17 = vadd.f32 %v3479_v10, %v1021_v15 }
 0x1d5   : > { %1279 = vmax.xlane.f32.xlu1 %v3490_v16 }
 0x1d6   : > { %v2696_v18 = vpop.f32.mrb[4].mxu1  ;;  %1275 = vmax.xlane.f32.xlu0 %v3493_v17 }
 0x1d7   : > { %v3498_v19 = vadd.f32 %v2696_v18, %v3479_v10  ;;  %v1034_v20 = vpop.f32.mrb[5].mxu1 }
 0x1d8   : > { %v2697_v21 = vpop.f32.mrb[6].mxu1  ;;  %v3506_v24 = vadd.f32 %v3479_v10, %v1034_v20 }
 0x1d9   : > { %v3501_v22 = vadd.f32 %v2697_v21, %v3479_v10  ;;  %v1037_v23 = vpop.f32.mrb[7].mxu1 }
 0x1da   : > { %1285 = vmax.xlane.f32.xlu0 %v3498_v19  ;;  %v3509_v25 = vadd.f32 %v3479_v10, %v1037_v23 }
 0x1db   : > { %1287 = vmax.xlane.f32.xlu1 %v3501_v22 }
 0x1de   : > { %v2700_v26 = vpop.f32.mrb[8].mxu1  ;;  %1281 = vmax.xlane.f32.xlu0 %v3506_v24 }
 0x1df   : > { %v3513_v27 = vadd.f32 %v2700_v26, %v3479_v10  ;;  %v1050_v28 = vpop.f32.mrb[9].mxu1  ;;  %1283 = vmax.xlane.f32.xlu1 %v3509_v25 }
 0x1e0   : > { %v2701_v29 = vpop.f32.mrb[10].mxu1  ;;  %v3522_v32 = vadd.f32 %v3479_v10, %v1050_v28 }
 0x1e1   : > { %v3517_v30 = vadd.f32 %v2701_v29, %v3479_v10  ;;  %v1053_v31 = vpop.f32.mrb[11].mxu1 }
 0x1e2   : > { %1293 = vmax.xlane.f32.xlu0 %v3513_v27  ;;  %v3525_v33 = vadd.f32 %v3479_v10, %v1053_v31 }
 0x1e3   : > { %1295 = vmax.xlane.f32.xlu1 %v3517_v30 }
 0x1e6   : > { %v2704_v34 = vpop.f32.mrb[12].mxu1  ;;  %1289 = vmax.xlane.f32.xlu0 %v3522_v32 }
 0x1e7   : > { %v3529_v35 = vadd.f32 %v2704_v34, %v3479_v10  ;;  %v1066_v36 = vpop.f32.mrb[13].mxu1  ;;  %1291 = vmax.xlane.f32.xlu1 %v3525_v33 }
 0x1e8   : > { %v2705_v37 = vpop.f32.mrb[14].mxu1  ;;  %v3538_v41 = vadd.f32 %v3479_v10, %v1066_v36 }
 0x1e9   : > { %v3533_v39 = vadd.f32 %v2705_v37, %v3479_v10  ;;  %v1069_v40 = vpop.f32.mrb[15].mxu1 }
 0x1ea   : > { %1301 = vmax.xlane.f32.xlu0 %v3529_v35  ;;  %v3541_v42 = vadd.f32 %v3479_v10, %v1069_v40 }
 0x1eb   : > { %1303 = vmax.xlane.f32.xlu1 %v3533_v39 }
 0x1ee   : > { %v2708_v43 = vpop.f32.mrb[16].mxu1  ;;  %1297 = vmax.xlane.f32.xlu0 %v3538_v41 }
 0x1ef   : > { %v3545_v44 = vadd.f32 %v2708_v43, %v3479_v10  ;;  %v1082_v45 = vpop.f32.mrb[17].mxu1  ;;  %1299 = vmax.xlane.f32.xlu1 %v3541_v42 }
 0x1f0   : > { %v2709_v46 = vpop.f32.mrb[18].mxu1  ;;  %v3554_v49 = vadd.f32 %v3479_v10, %v1082_v45 }
 0x1f1   : > { %v3549_v47 = vadd.f32 %v2709_v46, %v3479_v10  ;;  %v1085_v48 = vpop.f32.mrb[19].mxu1 }
 0x1f2   : > { %1309 = vmax.xlane.f32.xlu0 %v3545_v44  ;;  %v3557_v50 = vadd.f32 %v3479_v10, %v1085_v48 }
 0x1f3   : > { %1311 = vmax.xlane.f32.xlu1 %v3549_v47 }
 0x1f6   : > { %v2712_v51 = vpop.f32.mrb[20].mxu1  ;;  %1305 = vmax.xlane.f32.xlu0 %v3554_v49 }
 0x1f7   : > { %v3561_v52 = vadd.f32 %v2712_v51, %v3479_v10  ;;  %v1098_v53 = vpop.f32.mrb[21].mxu1  ;;  %1307 = vmax.xlane.f32.xlu1 %v3557_v50 }
 0x1f8   : > { %v2713_v54 = vpop.f32.mrb[22].mxu1  ;;  %v3570_v57 = vadd.f32 %v3479_v10, %v1098_v53 }
 0x1f9   : > { %v3565_v55 = vadd.f32 %v2713_v54, %v3479_v10  ;;  %v1101_v56 = vpop.f32.mrb[23].mxu1 }
 0x1fa   : > { %1317 = vmax.xlane.f32.xlu0 %v3561_v52  ;;  %v3573_v58 = vadd.f32 %v3479_v10, %v1101_v56 }
 0x1fb   : > { %1319 = vmax.xlane.f32.xlu1 %v3565_v55 }
 0x1fe   : > { %v2716_v59 = vpop.f32.mrb[24].mxu1  ;;  %1313 = vmax.xlane.f32.xlu0 %v3570_v57 }
 0x1ff   : > { %v3577_v60 = vadd.f32 %v2716_v59, %v3479_v10  ;;  %v1114_v61 = vpop.f32.mrb[25].mxu1  ;;  %1315 = vmax.xlane.f32.xlu1 %v3573_v58 }
 0x200   : > { %v2717_v62 = vpop.f32.mrb[26].mxu1  ;;  %v3586_v1 = vadd.f32 %v3479_v10, %v1114_v61 }
 0x201   : > { %v3581_v63 = vadd.f32 %v2717_v62, %v3479_v10  ;;  %v1117_v0 = vpop.f32.mrb[27].mxu1 }
 0x202   : > { %1325 = vmax.xlane.f32.xlu0 %v3577_v60  ;;  %v3589_v2 = vadd.f32 %v3479_v10, %v1117_v0 }
 0x203   : > { %1327 = vmax.xlane.f32.xlu1 %v3581_v63 }
 0x206   : > { %v2720_v3 = vpop.f32.mrb[28].mxu1  ;;  %1321 = vmax.xlane.f32.xlu0 %v3586_v1 }
 0x207   : > { %v3593_v4 = vadd.f32 %v2720_v3, %v3479_v10  ;;  %v1130_v5 = vpop.f32.mrb[29].mxu1  ;;  %1323 = vmax.xlane.f32.xlu1 %v3589_v2 }
 0x208   : > { %v2721_v6 = vpop.f32.mrb[30].mxu1  ;;  %v3602_v9 = vadd.f32 %v3479_v10, %v1130_v5 }
 0x209   : > { %v3597_v7 = vadd.f32 %v2721_v6, %v3479_v10  ;;  %v1133_v8 = vpop.f32.mrb[31].mxu1 }
 0x20a   : > { %1333 = vmax.xlane.f32.xlu0 %v3593_v4  ;;  %v3605_v11 = vadd.f32 %v3479_v10, %v1133_v8 }
 0x20b   : > { %1335 = vmax.xlane.f32.xlu1 %v3597_v7 }
 0x20e   : > { %v2724_v38 = vpop.f32.mrb[32].mxu1  ;;  %1329 = vmax.xlane.f32.xlu0 %v3602_v9 }
 0x20f   : > { %v3609_v14 = vadd.f32 %v2724_v38, %v3479_v10  ;;  %v1146_v15 = vpop.f32.mrb[33].mxu1  ;;  %1331 = vmax.xlane.f32.xlu1 %v3605_v11 }
 0x210   : > { %v2725_v18 = vpop.f32.mrb[34].mxu1  ;;  %v3618_v23 = vadd.f32 %v3479_v10, %v1146_v15 }
 0x211   : > { %v3613_v20 = vadd.f32 %v2725_v18, %v3479_v10  ;;  %v1149_v21 = vpop.f32.mrb[35].mxu1 }
 0x212   : > { %1341 = vmax.xlane.f32.xlu0 %v3609_v14  ;;  %v3621_v26 = vadd.f32 %v3479_v10, %v1149_v21 }
 0x213   : > { %1343 = vmax.xlane.f32.xlu1 %v3613_v20 }
 0x216   : > { %v2728_v28 = vpop.f32.mrb[36].mxu1  ;;  %1337 = vmax.xlane.f32.xlu0 %v3618_v23 }
 0x217   : > { %v3625_v29 = vadd.f32 %v2728_v28, %v3479_v10  ;;  %v1162_v31 = vpop.f32.mrb[37].mxu1  ;;  %1339 = vmax.xlane.f32.xlu1 %v3621_v26 }
 0x218   : > { %v2729_v34 = vpop.f32.mrb[38].mxu1  ;;  %v3634_v40 = vadd.f32 %v3479_v10, %v1162_v31 }
 0x219   : > { %v3629_v36 = vadd.f32 %v2729_v34, %v3479_v10  ;;  %v1165_v37 = vpop.f32.mrb[39].mxu1 }
 0x21a   : > { %1349 = vmax.xlane.f32.xlu0 %v3625_v29  ;;  %v3637_v43 = vadd.f32 %v3479_v10, %v1165_v37 }
 0x21b   : > { %1351 = vmax.xlane.f32.xlu1 %v3629_v36 }
 0x21e   : > { %v2732_v45 = vpop.f32.mrb[40].mxu1  ;;  %1345 = vmax.xlane.f32.xlu0 %v3634_v40 }
 0x21f   : > { %v3641_v46 = vadd.f32 %v2732_v45, %v3479_v10  ;;  %v1178_v48 = vpop.f32.mrb[41].mxu1  ;;  %1347 = vmax.xlane.f32.xlu1 %v3637_v43 }
 0x220   : > { %v2733_v51 = vpop.f32.mrb[42].mxu1  ;;  %v3650_v56 = vadd.f32 %v3479_v10, %v1178_v48 }
 0x221   : > { %v3645_v53 = vadd.f32 %v2733_v51, %v3479_v10  ;;  %v1181_v54 = vpop.f32.mrb[43].mxu1 }
 0x222   : > { %1357 = vmax.xlane.f32.xlu0 %v3641_v46  ;;  %v3653_v59 = vadd.f32 %v3479_v10, %v1181_v54 }
 0x223   : > { %1359 = vmax.xlane.f32.xlu1 %v3645_v53 }
 0x226   : > { %v2736_v61 = vpop.f32.mrb[44].mxu1  ;;  %1353 = vmax.xlane.f32.xlu0 %v3650_v56 }
 0x227   : > { %v3657_v62 = vadd.f32 %v2736_v61, %v3479_v10  ;;  %v1194_v0 = vpop.f32.mrb[45].mxu1  ;;  %1355 = vmax.xlane.f32.xlu1 %v3653_v59 }
 0x228   : > { %v2737_v3 = vpop.f32.mrb[46].mxu1  ;;  %v3666_v8 = vadd.f32 %v3479_v10, %v1194_v0 }
 0x229   : > { %v3661_v5 = vadd.f32 %v2737_v3, %v3479_v10  ;;  %v1197_v6 = vpop.f32.mrb[47].mxu1 }
 0x22a   : > { %1365 = vmax.xlane.f32.xlu0 %v3657_v62  ;;  %v3669_v38 = vadd.f32 %v3479_v10, %v1197_v6 }
 0x22b   : > { %1367 = vmax.xlane.f32.xlu1 %v3661_v5 }
 0x22e   : > { %v2740_v15 = vpop.f32.mrb[48].mxu1  ;;  %1361 = vmax.xlane.f32.xlu0 %v3666_v8 }
 0x22f   : > { %v3673_v18 = vadd.f32 %v2740_v15, %v3479_v10  ;;  %v1210_v21 = vpop.f32.mrb[49].mxu1  ;;  %1363 = vmax.xlane.f32.xlu1 %v3669_v38 }
 0x230   : > { %v2741_v28 = vpop.f32.mrb[50].mxu1  ;;  %v3682_v37 = vadd.f32 %v3479_v10, %v1210_v21 }
 0x231   : > { %v3677_v31 = vadd.f32 %v2741_v28, %v3479_v10  ;;  %v1213_v34 = vpop.f32.mrb[51].mxu1 }
 0x232   : > { %1373 = vmax.xlane.f32.xlu0 %v3673_v18  ;;  %4427 = vst [vmem:[#allocation3_spill] sm:$0xff] %v3682_v37  ;;  %v3685_v45 = vadd.f32 %v3479_v10, %v1213_v34 }
 0x233   : > { %1375 = vmax.xlane.f32.xlu1 %v3677_v31 }
 0x234   : > { %4428 = vst [vmem:[#allocation4_spill] sm:$0xff] %v3685_v45 }
 0x236   : > { %v2744_v48 = vpop.f32.mrb[52].mxu1  ;;  %1369 = vmax.xlane.f32.xlu0 %v3682_v37 }
 0x237   : > { %v3689_v51 = vadd.f32 %v2744_v48, %v3479_v10  ;;  %v1226_v54 = vpop.f32.mrb[53].mxu1  ;;  %1371 = vmax.xlane.f32.xlu1 %v3685_v45 }
 0x238   : > { %v2745_v61 = vpop.f32.mrb[54].mxu1  ;;  %v3698_v6 = vadd.f32 %v3479_v10, %v1226_v54 }
 0x239   : > { %4429 = vst [vmem:[#allocation5_spill] sm:$0xff] %v3689_v51  ;;  %v3693_v0 = vadd.f32 %v2745_v61, %v3479_v10  ;;  %v1229_v3 = vpop.f32.mrb[55].mxu1 }
 0x23a   : > { %1381 = vmax.xlane.f32.xlu0 %v3689_v51  ;;  %4431 = vst [vmem:[#allocation7_spill] sm:$0xff] %v3698_v6  ;;  %v3701_v15 = vadd.f32 %v3479_v10, %v1229_v3 }
 0x23b   : > { %4430 = vst [vmem:[#allocation6_spill] sm:$0xff] %v3693_v0  ;;  %1383 = vmax.xlane.f32.xlu1 %v3693_v0 }
 0x23c   : > { %4432 = vst [vmem:[#allocation8_spill] sm:$0xff] %v3701_v15 }
 0x23e   : > { %v2748_v21 = vpop.f32.mrb[56].mxu1  ;;  %1377 = vmax.xlane.f32.xlu0 %v3698_v6 }
 0x23f   : > { %v3705_v28 = vadd.f32 %v2748_v21, %v3479_v10  ;;  %v1242_v34 = vpop.f32.mrb[57].mxu1  ;;  %1379 = vmax.xlane.f32.xlu1 %v3701_v15 }
 0x240   : > { %v2749_v48 = vpop.f32.mrb[58].mxu1  ;;  %v3714_v54 = vadd.f32 %v3479_v10, %v1242_v34 }
 0x241   : > { %4433 = vst [vmem:[#allocation9_spill] sm:$0xff] %v3705_v28  ;;  %v3709_v61 = vadd.f32 %v2749_v48, %v3479_v10  ;;  %v1245_v0 = vpop.f32.mrb[59].mxu1 }
 0x242   : > { %1389 = vmax.xlane.f32.xlu0 %v3705_v28  ;;  %4435 = vst [vmem:[#allocation11_spill] sm:$0xff] %v3714_v54  ;;  %v3717_v3 = vadd.f32 %v3479_v10, %v1245_v0 }
 0x243   : > { %4434 = vst [vmem:[#allocation10_spill] sm:$0xff] %v3709_v61  ;;  %1391 = vmax.xlane.f32.xlu1 %v3709_v61 }
 0x244   : > { %4436 = vst [vmem:[#allocation12_spill] sm:$0xff] %v3717_v3 }
 0x246   : > { %v2752_v21 = vpop.f32.mrb[60].mxu1  ;;  %1385 = vmax.xlane.f32.xlu0 %v3714_v54 }
 0x247   : > { %v3721_v15 = vadd.f32 %v2752_v21, %v3479_v10  ;;  %v1258_v6 = vpop.f32.mrb[61].mxu1  ;;  %1387 = vmax.xlane.f32.xlu1 %v3717_v3 }
 0x248   : > { %v2753_v48 = vpop.f32.mrb[62].mxu1  ;;  %v3730_v0 = vadd.f32 %v3479_v10, %v1258_v6 }
 0x249   : > { %4437 = vst [vmem:[#allocation13_spill] sm:$0xff] %v3721_v15  ;;  %v3725_v28 = vadd.f32 %v2753_v48, %v3479_v10  ;;  %v1261_v61 = vpop.f32.mrb[63].mxu1 }
 0x24a   : > { %1397 = vmax.xlane.f32.xlu0 %v3721_v15  ;;  %4439 = vst [vmem:[#allocation15_spill] sm:$0xff] %v3730_v0  ;;  %v3733_v34 = vadd.f32 %v3479_v10, %v1261_v61 }
 0x24b   : > { %4438 = vst [vmem:[#allocation14_spill] sm:$0xff] %v3725_v28  ;;  %1399 = vmax.xlane.f32.xlu1 %v3725_v28 }
 0x24c   : > { %4440 = vst [vmem:[#allocation16_spill] sm:$0xff] %v3733_v34 }
 0x24e   : > { %1393 = vmax.xlane.f32.xlu0 %v3730_v0 }
 0x24f   : > { %1395 = vmax.xlane.f32.xlu1 %v3733_v34 }
 0x25e   : > { %v1278_v21 = vpop.xlane.xlu1 %1277 }
 0x25f   : > { %v1403_v3 = vsub.f32 %v3482_v12, %v1278_v21  ;;  %v1274_v48 = vpop.xlane.xlu0 %1273 }
 0x260   : > { %v1401_v54 = vsub.f32 %v3485_v13, %v1274_v48 }
 0x261   : > { %v1469_v51 = vmul.f32 1.442695, %v1403_v3 }
 0x262   : > { %v1465_v15 = vmul.f32 1.442695, %v1401_v54  ;;  %v1280_v45 = vpop.xlane.xlu1 %1279 }
 0x263   : > { %2848 = vpow2.f32 %v1469_v51  ;;  %v1404_v6 = vsub.f32 %v3490_v16, %v1280_v45  ;;  %v1276_v28 = vpop.xlane.xlu0 %1275 }
 0x264   : > { %v1402_v10 = vsub.f32 %v3493_v17, %v1276_v28  ;;  %2850 = vpow2.f32 %v1465_v15 }
 0x265   : > { %v1471_v61 = vmul.f32 1.442695, %v1404_v6 }
 0x266   : > { %v1467_v0 = vmul.f32 1.442695, %v1402_v10 }
 0x267   : > { %2852 = vpow2.f32 %v1471_v61  ;;  %v1286_v34 = vpop.xlane.xlu0 %1285 }
 0x268   : > { %v1407_v37 = vsub.f32 %v3498_v19, %v1286_v34  ;;  %v1288_v12 = vpop.xlane.xlu1 %1287  ;;  %2854 = vpow2.f32 %v1467_v0 }
 0x269   : > { %v1408_v21 = vsub.f32 %v3501_v22, %v1288_v12 }
 0x26a   : > { %v1477_v13 = vmul.f32 1.442695, %v1407_v37 }
 0x26b   : > { %v1479_v54 = vmul.f32 1.442695, %v1408_v21  ;;  %v1282_v3 = vpop.xlane.xlu0 %1281 }
 0x26c   : > { %2856 = vpow2.f32 %v1477_v13  ;;  %v1405_v16 = vsub.f32 %v3506_v24, %v1282_v3  ;;  %v1284_v45 = vpop.xlane.xlu1 %1283 }
 0x26d   : > { %v3744_v51 = vpop.eup %2848  ;;  %v1406_v17 = vsub.f32 %v3509_v25, %v1284_v45  ;;  %2858 = vpow2.f32 %v1479_v54 }
 0x26e   : > { %v1473_v15 = vmul.f32 1.442695, %v1405_v16  ;;  %1597 = vadd.xlane.f32.xlu0 %v3744_v51  ;;  %v3748_v34 = vpop.eup %2850 }
 0x26f   : > { %v1475_v19 = vmul.f32 1.442695, %v1406_v17  ;;  %v1294_v28 = vpop.xlane.xlu0 %1293 }
 0x270   : > { %2860 = vpow2.f32 %v1473_v15  ;;  %v1411_v22 = vsub.f32 %v3513_v27, %v1294_v28  ;;  %v1296_v37 = vpop.xlane.xlu1 %1295 }
 0x271   : > { %v3751_v0 = vpop.eup %2852  ;;  %v1412_v24 = vsub.f32 %v3517_v30, %v1296_v37  ;;  %2862 = vpow2.f32 %v1475_v19 }
 0x272   : > { %v1485_v48 = vmul.f32 1.442695, %v1411_v22  ;;  %1599 = vadd.xlane.f32.xlu1 %v3751_v0  ;;  %1593 = vadd.xlane.f32.xlu0 %v3748_v34  ;;  %v3757_v12 = vpop.eup %2854 }
 0x273   : > { %v1487_v25 = vmul.f32 1.442695, %v1412_v24  ;;  %v1290_v6 = vpop.xlane.xlu0 %1289 }
 0x274   : > { %2864 = vpow2.f32 %v1485_v48  ;;  %v1409_v10 = vsub.f32 %v3522_v32, %v1290_v6  ;;  %v1292_v61 = vpop.xlane.xlu1 %1291 }
 0x275   : > { %v1410_v27 = vsub.f32 %v3525_v33, %v1292_v61  ;;  %2866 = vpow2.f32 %v1487_v25 }
 0x276   : > { %v3760_v21 = vpop.eup %2856  ;;  %v1481_v13 = vmul.f32 1.442695, %v1409_v10  ;;  %1595 = vadd.xlane.f32.xlu1 %v3757_v12 }
 0x277   : > { %v1483_v30 = vmul.f32 1.442695, %v1410_v27  ;;  %1605 = vadd.xlane.f32.xlu0 %v3760_v21  ;;  %v1302_v54 = vpop.xlane.xlu0 %1301  ;;  %v3765_v32 = vpop.eup %2858 }
 0x278   : > { %2868 = vpow2.f32 %v1481_v13  ;;  %v1415_v3 = vsub.f32 %v3529_v35, %v1302_v54  ;;  %v1304_v16 = vpop.xlane.xlu1 %1303 }
 0x279   : > { %v1416_v45 = vsub.f32 %v3533_v39, %v1304_v16  ;;  %2870 = vpow2.f32 %v1483_v30 }
 0x27a   : > { %v3768_v17 = vpop.eup %2860  ;;  %v1493_v33 = vmul.f32 1.442695, %v1415_v3  ;;  %1607 = vadd.xlane.f32.xlu1 %v3765_v32 }
 0x27b   : > { %v1495_v15 = vmul.f32 1.442695, %v1416_v45  ;;  %1601 = vadd.xlane.f32.xlu0 %v3768_v17  ;;  %v1298_v19 = vpop.xlane.xlu0 %1297  ;;  %v3773_v35 = vpop.eup %2862 }
 0x27c   : > { %2872 = vpow2.f32 %v1493_v33  ;;  %v1413_v28 = vsub.f32 %v3538_v41, %v1298_v19  ;;  %v1300_v22 = vpop.xlane.xlu1 %1299 }
 0x27d   : > { %v1414_v37 = vsub.f32 %v3541_v42, %v1300_v22  ;;  %2874 = vpow2.f32 %v1495_v15 }
 0x27e   : > { %v3776_v24 = vpop.eup %2864  ;;  %v1489_v39 = vmul.f32 1.442695, %v1413_v28  ;;  %1603 = vadd.xlane.f32.xlu1 %v3773_v35 }
 0x27f   : > { %v1491_v48 = vmul.f32 1.442695, %v1414_v37  ;;  %1613 = vadd.xlane.f32.xlu0 %v3776_v24  ;;  %v1310_v25 = vpop.xlane.xlu0 %1309  ;;  %v3781_v41 = vpop.eup %2866 }
 0x280   : > { %2876 = vpow2.f32 %v1489_v39  ;;  %v1419_v6 = vsub.f32 %v3545_v44, %v1310_v25  ;;  %v1312_v10 = vpop.xlane.xlu1 %1311 }
 0x281   : > { %v1420_v61 = vsub.f32 %v3549_v47, %v1312_v10  ;;  %2878 = vpow2.f32 %v1491_v48 }
 0x282   : > { %v3784_v27 = vpop.eup %2868  ;;  %v1501_v42 = vmul.f32 1.442695, %v1419_v6  ;;  %1615 = vadd.xlane.f32.xlu1 %v3781_v41 }
 0x283   : > { %v1503_v13 = vmul.f32 1.442695, %v1420_v61  ;;  %1609 = vadd.xlane.f32.xlu0 %v3784_v27  ;;  %v1306_v30 = vpop.xlane.xlu0 %1305  ;;  %v3789_v44 = vpop.eup %2870 }
 0x284   : > { %2880 = vpow2.f32 %v1501_v42  ;;  %v1417_v54 = vsub.f32 %v3554_v49, %v1306_v30  ;;  %v1308_v3 = vpop.xlane.xlu1 %1307 }
 0x285   : > { %v1418_v16 = vsub.f32 %v3557_v50, %v1308_v3  ;;  %2882 = vpow2.f32 %v1503_v13 }
 0x286   : > { %v3792_v45 = vpop.eup %2872  ;;  %v1497_v47 = vmul.f32 1.442695, %v1417_v54  ;;  %1611 = vadd.xlane.f32.xlu1 %v3789_v44 }
 0x287   : > { %v1499_v33 = vmul.f32 1.442695, %v1418_v16  ;;  %1621 = vadd.xlane.f32.xlu0 %v3792_v45  ;;  %v1318_v15 = vpop.xlane.xlu0 %1317  ;;  %v3797_v49 = vpop.eup %2874 }
 0x288   : > { %2884 = vpow2.f32 %v1497_v47  ;;  %v1423_v19 = vsub.f32 %v3561_v52, %v1318_v15  ;;  %v1320_v28 = vpop.xlane.xlu1 %1319 }
 0x289   : > { %v1424_v22 = vsub.f32 %v3565_v55, %v1320_v28  ;;  %2886 = vpow2.f32 %v1499_v33 }
 0x28a   : > { %v3800_v37 = vpop.eup %2876  ;;  %v1509_v50 = vmul.f32 1.442695, %v1423_v19  ;;  %1623 = vadd.xlane.f32.xlu1 %v3797_v49 }
 0x28b   : > { %v1511_v39 = vmul.f32 1.442695, %v1424_v22  ;;  %1617 = vadd.xlane.f32.xlu0 %v3800_v37  ;;  %v1314_v48 = vpop.xlane.xlu0 %1313  ;;  %v3805_v52 = vpop.eup %2878 }
 0x28c   : > { %2888 = vpow2.f32 %v1509_v50  ;;  %v1421_v25 = vsub.f32 %v3570_v57, %v1314_v48  ;;  %v1316_v6 = vpop.xlane.xlu1 %1315 }
 0x28d   : > { %v1422_v10 = vsub.f32 %v3573_v58, %v1316_v6  ;;  %2890 = vpow2.f32 %v1511_v39 }
 0x28e   : > { %v3808_v61 = vpop.eup %2880  ;;  %v1505_v55 = vmul.f32 1.442695, %v1421_v25  ;;  %1619 = vadd.xlane.f32.xlu1 %v3805_v52 }
 0x28f   : > { %v1507_v42 = vmul.f32 1.442695, %v1422_v10  ;;  %1629 = vadd.xlane.f32.xlu0 %v3808_v61  ;;  %v1326_v13 = vpop.xlane.xlu0 %1325  ;;  %v3813_v57 = vpop.eup %2882 }
 0x290   : > { %2892 = vpow2.f32 %v1505_v55  ;;  %v1427_v30 = vsub.f32 %v3577_v60, %v1326_v13  ;;  %v1328_v54 = vpop.xlane.xlu1 %1327 }
 0x291   : > { %v1428_v3 = vsub.f32 %v3581_v63, %v1328_v54  ;;  %2894 = vpow2.f32 %v1507_v42 }
 0x292   : > { %v3816_v16 = vpop.eup %2884  ;;  %v1517_v58 = vmul.f32 1.442695, %v1427_v30  ;;  %1631 = vadd.xlane.f32.xlu1 %v3813_v57 }
 0x293   : > { %v1519_v47 = vmul.f32 1.442695, %v1428_v3  ;;  %1625 = vadd.xlane.f32.xlu0 %v3816_v16  ;;  %v1322_v33 = vpop.xlane.xlu0 %1321  ;;  %v3821_v60 = vpop.eup %2886 }
 0x294   : > { %2896 = vpow2.f32 %v1517_v58  ;;  %v1425_v15 = vsub.f32 %v3586_v1, %v1322_v33  ;;  %v1324_v19 = vpop.xlane.xlu1 %1323 }
 0x295   : > { %v1426_v28 = vsub.f32 %v3589_v2, %v1324_v19  ;;  %2898 = vpow2.f32 %v1519_v47 }
 0x296   : > { %v3824_v22 = vpop.eup %2888  ;;  %v1513_v63 = vmul.f32 1.442695, %v1425_v15  ;;  %1627 = vadd.xlane.f32.xlu1 %v3821_v60 }
 0x297   : > { %v1515_v50 = vmul.f32 1.442695, %v1426_v28  ;;  %1637 = vadd.xlane.f32.xlu0 %v3824_v22  ;;  %v1334_v39 = vpop.xlane.xlu0 %1333  ;;  %v3829_v1 = vpop.eup %2890 }
 0x298   : > { %2900 = vpow2.f32 %v1513_v63  ;;  %v1431_v48 = vsub.f32 %v3593_v4, %v1334_v39  ;;  %v1336_v25 = vpop.xlane.xlu1 %1335 }
 0x299   : > { %v1432_v6 = vsub.f32 %v3597_v7, %v1336_v25  ;;  %2902 = vpow2.f32 %v1515_v50 }
 0x29a   : > { %v3832_v10 = vpop.eup %2892  ;;  %v1525_v2 = vmul.f32 1.442695, %v1431_v48  ;;  %1639 = vadd.xlane.f32.xlu1 %v3829_v1 }
 0x29b   : > { %v1527_v55 = vmul.f32 1.442695, %v1432_v6  ;;  %1633 = vadd.xlane.f32.xlu0 %v3832_v10  ;;  %v1330_v42 = vpop.xlane.xlu0 %1329  ;;  %v3837_v4 = vpop.eup %2894 }
 0x29c   : > { %2904 = vpow2.f32 %v1525_v2  ;;  %v1429_v13 = vsub.f32 %v3602_v9, %v1330_v42  ;;  %v1332_v30 = vpop.xlane.xlu1 %1331 }
 0x29d   : > { %v1430_v54 = vsub.f32 %v3605_v11, %v1332_v30  ;;  %2906 = vpow2.f32 %v1527_v55 }
 0x29e   : > { %v3840_v3 = vpop.eup %2896  ;;  %v1521_v7 = vmul.f32 1.442695, %v1429_v13  ;;  %1635 = vadd.xlane.f32.xlu1 %v3837_v4 }
 0x29f   : > { %v1523_v58 = vmul.f32 1.442695, %v1430_v54  ;;  %1645 = vadd.xlane.f32.xlu0 %v3840_v3  ;;  %v1342_v47 = vpop.xlane.xlu0 %1341  ;;  %v3845_v9 = vpop.eup %2898 }
 0x2a0   : > { %2908 = vpow2.f32 %v1521_v7  ;;  %v1435_v33 = vsub.f32 %v3609_v14, %v1342_v47  ;;  %v1344_v15 = vpop.xlane.xlu1 %1343 }
 0x2a1   : > { %v1436_v19 = vsub.f32 %v3613_v20, %v1344_v15  ;;  %2910 = vpow2.f32 %v1523_v58 }
 0x2a2   : > { %v3848_v28 = vpop.eup %2900  ;;  %v1533_v11 = vmul.f32 1.442695, %v1435_v33  ;;  %1647 = vadd.xlane.f32.xlu1 %v3845_v9 }
 0x2a3   : > { %v1535_v63 = vmul.f32 1.442695, %v1436_v19  ;;  %1641 = vadd.xlane.f32.xlu0 %v3848_v28  ;;  %v1338_v50 = vpop.xlane.xlu0 %1337  ;;  %v3853_v14 = vpop.eup %2902 }
 0x2a4   : > { %2912 = vpow2.f32 %v1533_v11  ;;  %v1433_v39 = vsub.f32 %v3618_v23, %v1338_v50  ;;  %v1340_v48 = vpop.xlane.xlu1 %1339 }
 0x2a5   : > { %v1434_v25 = vsub.f32 %v3621_v26, %v1340_v48  ;;  %2914 = vpow2.f32 %v1535_v63 }
 0x2a6   : > { %v3856_v6 = vpop.eup %2904  ;;  %v1529_v20 = vmul.f32 1.442695, %v1433_v39  ;;  %1643 = vadd.xlane.f32.xlu1 %v3853_v14 }
 0x2a7   : > { %v1531_v2 = vmul.f32 1.442695, %v1434_v25  ;;  %1653 = vadd.xlane.f32.xlu0 %v3856_v6  ;;  %v1350_v55 = vpop.xlane.xlu0 %1349  ;;  %v3861_v23 = vpop.eup %2906 }
 0x2a8   : > { %2916 = vpow2.f32 %v1529_v20  ;;  %v1439_v42 = vsub.f32 %v3625_v29, %v1350_v55  ;;  %v1352_v13 = vpop.xlane.xlu1 %1351 }
 0x2a9   : > { %v1440_v30 = vsub.f32 %v3629_v36, %v1352_v13  ;;  %2918 = vpow2.f32 %v1531_v2 }
 0x2aa   : > { %v3864_v54 = vpop.eup %2908  ;;  %v1541_v26 = vmul.f32 1.442695, %v1439_v42  ;;  %1655 = vadd.xlane.f32.xlu1 %v3861_v23 }
 0x2ab   : > { %v1543_v7 = vmul.f32 1.442695, %v1440_v30  ;;  %1649 = vadd.xlane.f32.xlu0 %v3864_v54  ;;  %v1346_v58 = vpop.xlane.xlu0 %1345  ;;  %v3869_v29 = vpop.eup %2910 }
 0x2ac   : > { %2920 = vpow2.f32 %v1541_v26  ;;  %v1437_v47 = vsub.f32 %v3634_v40, %v1346_v58  ;;  %v1348_v33 = vpop.xlane.xlu1 %1347 }
 0x2ad   : > { %v1438_v15 = vsub.f32 %v3637_v43, %v1348_v33  ;;  %2922 = vpow2.f32 %v1543_v7 }
 0x2ae   : > { %v3872_v19 = vpop.eup %2912  ;;  %v1537_v36 = vmul.f32 1.442695, %v1437_v47  ;;  %1651 = vadd.xlane.f32.xlu1 %v3869_v29 }
 0x2af   : > { %v1539_v11 = vmul.f32 1.442695, %v1438_v15  ;;  %1661 = vadd.xlane.f32.xlu0 %v3872_v19  ;;  %v1358_v63 = vpop.xlane.xlu0 %1357  ;;  %v3877_v40 = vpop.eup %2914 }
 0x2b0   : > { %2924 = vpow2.f32 %v1537_v36  ;;  %v1443_v50 = vsub.f32 %v3641_v46, %v1358_v63  ;;  %v1360_v39 = vpop.xlane.xlu1 %1359 }
 0x2b1   : > { %v1444_v48 = vsub.f32 %v3645_v53, %v1360_v39  ;;  %2926 = vpow2.f32 %v1539_v11 }
 0x2b2   : > { %v3880_v25 = vpop.eup %2916  ;;  %v1549_v43 = vmul.f32 1.442695, %v1443_v50  ;;  %1663 = vadd.xlane.f32.xlu1 %v3877_v40 }
 0x2b3   : > { %v1551_v20 = vmul.f32 1.442695, %v1444_v48  ;;  %1657 = vadd.xlane.f32.xlu0 %v3880_v25  ;;  %v1354_v2 = vpop.xlane.xlu0 %1353  ;;  %v3885_v46 = vpop.eup %2918 }
 0x2b4   : > { %2928 = vpow2.f32 %v1549_v43  ;;  %v1441_v55 = vsub.f32 %v3650_v56, %v1354_v2  ;;  %v1356_v42 = vpop.xlane.xlu1 %1355 }
 0x2b5   : > { %v1442_v13 = vsub.f32 %v3653_v59, %v1356_v42  ;;  %2930 = vpow2.f32 %v1551_v20 }
 0x2b6   : > { %v3888_v30 = vpop.eup %2920  ;;  %v1545_v53 = vmul.f32 1.442695, %v1441_v55  ;;  %1659 = vadd.xlane.f32.xlu1 %v3885_v46 }
 0x2b7   : > { %v1547_v26 = vmul.f32 1.442695, %v1442_v13  ;;  %1669 = vadd.xlane.f32.xlu0 %v3888_v30  ;;  %v1366_v7 = vpop.xlane.xlu0 %1365  ;;  %v3893_v56 = vpop.eup %2922 }
 0x2b8   : > { %2932 = vpow2.f32 %v1545_v53  ;;  %v1447_v58 = vsub.f32 %v3657_v62, %v1366_v7  ;;  %v1368_v47 = vpop.xlane.xlu1 %1367  ;;  %v4441_v7 = vld [vmem:[#allocation3_spill] sm:$0xff] }
 0x2b9   : > { %v1448_v33 = vsub.f32 %v3661_v5, %v1368_v47  ;;  %2934 = vpow2.f32 %v1547_v26 }
 0x2ba   : > { %v3896_v15 = vpop.eup %2924  ;;  %v1557_v59 = vmul.f32 1.442695, %v1447_v58  ;;  %1671 = vadd.xlane.f32.xlu1 %v3893_v56 }
 0x2bb   : > { %v1559_v36 = vmul.f32 1.442695, %v1448_v33  ;;  %1665 = vadd.xlane.f32.xlu0 %v3896_v15  ;;  %v1362_v11 = vpop.xlane.xlu0 %1361  ;;  %v3901_v62 = vpop.eup %2926  ;;  %v4442_v33 = vld [vmem:[#allocation4_spill] sm:$0xff] }
 0x2bc   : > { %2936 = vpow2.f32 %v1557_v59  ;;  %v1445_v63 = vsub.f32 %v3666_v8, %v1362_v11  ;;  %v1364_v50 = vpop.xlane.xlu1 %1363 }
 0x2bd   : > { %v1446_v39 = vsub.f32 %v3669_v38, %v1364_v50  ;;  %2938 = vpow2.f32 %v1559_v36  ;;  %v4443_v50 = vld [vmem:[#allocation5_spill] sm:$0xff] }
 0x2be   : > { %v3904_v48 = vpop.eup %2928  ;;  %v1553_v5 = vmul.f32 1.442695, %v1445_v63  ;;  %1667 = vadd.xlane.f32.xlu1 %v3901_v62 }
 0x2bf   : > { %v1555_v43 = vmul.f32 1.442695, %v1446_v39  ;;  %1677 = vadd.xlane.f32.xlu0 %v3904_v48  ;;  %v1374_v20 = vpop.xlane.xlu0 %1373  ;;  %v3909_v8 = vpop.eup %2930 }
 0x2c0   : > { %2940 = vpow2.f32 %v1553_v5  ;;  %v1451_v2 = vsub.f32 %v3673_v18, %v1374_v20  ;;  %v1376_v55 = vpop.xlane.xlu1 %1375  ;;  %v4444_v20 = vld [vmem:[#allocation6_spill] sm:$0xff] }
 0x2c1   : > { %v1452_v42 = vsub.f32 %v3677_v31, %v1376_v55  ;;  %2942 = vpow2.f32 %v1555_v43 }
 0x2c2   : > { %v3912_v13 = vpop.eup %2932  ;;  %v1565_v38 = vmul.f32 1.442695, %v1451_v2  ;;  %1679 = vadd.xlane.f32.xlu1 %v3909_v8 }
 0x2c3   : > { %v1567_v53 = vmul.f32 1.442695, %v1452_v42  ;;  %1673 = vadd.xlane.f32.xlu0 %v3912_v13  ;;  %v1370_v26 = vpop.xlane.xlu0 %1369  ;;  %v3917_v18 = vpop.eup %2934 }
 0x2c4   : > { %2944 = vpow2.f32 %v1565_v38  ;;  %v1449_v58 = vsub.f32 %v4441_v7, %v1370_v26  ;;  %v1372_v47 = vpop.xlane.xlu1 %1371  ;;  %v4446_v26 = vld [vmem:[#allocation7_spill] sm:$0xff] }
 0x2c5   : > { %v1450_v59 = vsub.f32 %v4442_v33, %v1372_v47  ;;  %2946 = vpow2.f32 %v1567_v53  ;;  %v4448_v33 = vld [vmem:[#allocation8_spill] sm:$0xff] }
 0x2c6   : > { %v3920_v36 = vpop.eup %2936  ;;  %v1561_v31 = vmul.f32 1.442695, %v1449_v58  ;;  %1675 = vadd.xlane.f32.xlu1 %v3917_v18 }
 0x2c7   : > { %v1563_v11 = vmul.f32 1.442695, %v1450_v59  ;;  %1685 = vadd.xlane.f32.xlu0 %v3920_v36  ;;  %v1382_v63 = vpop.xlane.xlu0 %1381  ;;  %v3925_v43 = vpop.eup %2938 }
 0x2c8   : > { %2948 = vpow2.f32 %v1561_v31  ;;  %v1455_v39 = vsub.f32 %v4443_v50, %v1382_v63  ;;  %v1384_v5 = vpop.xlane.xlu1 %1383 }
 0x2c9   : > { %v1456_v2 = vsub.f32 %v4444_v20, %v1384_v5  ;;  %2950 = vpow2.f32 %v1563_v11 }
 0x2ca   : > { %v3928_v55 = vpop.eup %2940  ;;  %v1573_v42 = vmul.f32 1.442695, %v1455_v39  ;;  %1687 = vadd.xlane.f32.xlu1 %v3925_v43  ;;  %v4450_v39 = vld [vmem:[#allocation9_spill] sm:$0xff] }
 0x2cb   : > { %4445 = vst [vmem:[#allocation3_spill] sm:$0xff] %v3928_v55  ;;  %v1575_v38 = vmul.f32 1.442695, %v1456_v2  ;;  %1681 = vadd.xlane.f32.xlu0 %v3928_v55  ;;  %v1378_v53 = vpop.xlane.xlu0 %1377  ;;  %v3933_v47 = vpop.eup %2942 }
 0x2cc   : > { %2952 = vpow2.f32 %v1573_v42  ;;  %v1453_v7 = vsub.f32 %v4446_v26, %v1378_v53  ;;  %v1380_v58 = vpop.xlane.xlu1 %1379  ;;  %4447 = vst [vmem:[#allocation4_spill] sm:$0xff] %v3933_v47  ;;  %v4452_v42 = vld [vmem:[#allocation10_spill] sm:$0xff] }
 0x2cd   : > { %v1454_v59 = vsub.f32 %v4448_v33, %v1380_v58  ;;  %2954 = vpow2.f32 %v1575_v38  ;;  %v4454_v33 = vld [vmem:[#allocation11_spill] sm:$0xff] }
 0x2ce   : > { %v3936_v31 = vpop.eup %2944  ;;  %v1569_v63 = vmul.f32 1.442695, %v1453_v7  ;;  %1683 = vadd.xlane.f32.xlu1 %v3933_v47 }
 0x2cf   : > { %4449 = vst [vmem:[#allocation5_spill] sm:$0xff] %v3936_v31  ;;  %v1571_v50 = vmul.f32 1.442695, %v1454_v59  ;;  %1693 = vadd.xlane.f32.xlu0 %v3936_v31  ;;  %v1390_v11 = vpop.xlane.xlu0 %1389  ;;  %v3941_v2 = vpop.eup %2946 }
 0x2d0   : > { %2956 = vpow2.f32 %v1569_v63  ;;  %v1459_v5 = vsub.f32 %v4450_v39, %v1390_v11  ;;  %v1392_v20 = vpop.xlane.xlu1 %1391  ;;  %4451 = vst [vmem:[#allocation6_spill] sm:$0xff] %v3941_v2  ;;  %v4456_v39 = vld [vmem:[#allocation12_spill] sm:$0xff] }
 0x2d1   : > { %v1460_v53 = vsub.f32 %v4452_v42, %v1392_v20  ;;  %2958 = vpow2.f32 %v1571_v50 }
 0x2d2   : > { %v3944_v26 = vpop.eup %2948  ;;  %v1581_v58 = vmul.f32 1.442695, %v1459_v5  ;;  %1695 = vadd.xlane.f32.xlu1 %v3941_v2 }
 0x2d3   : > { %4453 = vst [vmem:[#allocation7_spill] sm:$0xff] %v3944_v26  ;;  %v1583_v7 = vmul.f32 1.442695, %v1460_v53  ;;  %1689 = vadd.xlane.f32.xlu0 %v3944_v26  ;;  %v1386_v38 = vpop.xlane.xlu0 %1385  ;;  %v3949_v11 = vpop.eup %2950 }
 0x2d4   : > { %2960 = vpow2.f32 %v1581_v58  ;;  %v1457_v59 = vsub.f32 %v4454_v33, %v1386_v38  ;;  %v1388_v63 = vpop.xlane.xlu1 %1387  ;;  %4455 = vst [vmem:[#allocation8_spill] sm:$0xff] %v3949_v11  ;;  %v4459_v33 = vld [vmem:[#allocation13_spill] sm:$0xff] }
 0x2d5   : > { %v1458_v31 = vsub.f32 %v4456_v39, %v1388_v63  ;;  %2962 = vpow2.f32 %v1583_v7  ;;  %v4460_v63 = vld [vmem:[#allocation15_spill] sm:$0xff] }
 0x2d6   : > { %v3952_v47 = vpop.eup %2952  ;;  %v1577_v20 = vmul.f32 1.442695, %v1457_v59  ;;  %1691 = vadd.xlane.f32.xlu1 %v3949_v11  ;;  %v4462_v11 = vld [vmem:[#allocation16_spill] sm:$0xff] }
 0x2d7   : > { %4457 = vst [vmem:[#allocation9_spill] sm:$0xff] %v3952_v47  ;;  %v1579_v5 = vmul.f32 1.442695, %v1458_v31  ;;  %1701 = vadd.xlane.f32.xlu0 %v3952_v47  ;;  %v1398_v50 = vpop.xlane.xlu0 %1397  ;;  %v3956_v53 = vpop.eup %2954  ;;  %v4461_v47 = vld [vmem:[#allocation14_spill] sm:$0xff] }
 0x2d8   : > { %2964 = vpow2.f32 %v1577_v20  ;;  %v1400_v42 = vpop.xlane.xlu1 %1399  ;;  %v1463_v59 = vsub.f32 %v4459_v33, %v1398_v50 }
 0x2d9   : > { %2966 = vpow2.f32 %v1579_v5  ;;  %v1464_v20 = vsub.f32 %v4461_v47, %v1400_v42 }
 0x2da   : > { %v3958_v58 = vpop.eup %2956  ;;  %1703 = vadd.xlane.f32.xlu1 %v3956_v53 }
 0x2db   : > { %4458 = vst [vmem:[#allocation10_spill] sm:$0xff] %v3958_v58  ;;  %1697 = vadd.xlane.f32.xlu0 %v3958_v58  ;;  %v1394_v38 = vpop.xlane.xlu0 %1393  ;;  %v3964_v39 = vpop.eup %2958  ;;  %v1589_v58 = vmul.f32 1.442695, %v1463_v59 }
 0x2dc   : > { %v1461_v7 = vsub.f32 %v4460_v63, %v1394_v38  ;;  %v1396_v31 = vpop.xlane.xlu1 %1395  ;;  %v1591_v38 = vmul.f32 1.442695, %v1464_v20 }
 0x2dd   : > { %v1462_v26 = vsub.f32 %v4462_v11, %v1396_v31 }
 0x2de   : > { %v3968_v2 = vpop.eup %2960  ;;  %v1585_v55 = vmul.f32 1.442695, %v1461_v7  ;;  %1699 = vadd.xlane.f32.xlu1 %v3964_v39 }
 0x2df   : > { %v1587_v5 = vmul.f32 1.442695, %v1462_v26  ;;  %1709 = vadd.xlane.f32.xlu0 %v3968_v2  ;;  %v3972_v50 = vpop.eup %2962 }
 0x2e0   : > { %2968 = vpow2.f32 %v1585_v55 }
 0x2e1   : > { %2970 = vpow2.f32 %v1587_v5 }
 0x2e2   : > { %v3974_v33 = vpop.eup %2964  ;;  %1711 = vadd.xlane.f32.xlu1 %v3972_v50  ;;  %2972 = vpow2.f32 %v1589_v58 }
 0x2e3   : > { %1705 = vadd.xlane.f32.xlu0 %v3974_v33  ;;  %v3978_v47 = vpop.eup %2966  ;;  %2974 = vpow2.f32 %v1591_v38 }
 0x2e6   : > { %1707 = vadd.xlane.f32.xlu1 %v3978_v47 }
 0x2ea   : > { %v3981_v26 = vpop.eup %2968 }
 0x2eb   : > { %4463 = vst [vmem:[#allocation11_spill] sm:$0xff] %v3981_v26  ;;  %v3983_v55 = vpop.eup %2970  ;;  %1713 = vadd.xlane.f32.xlu0 %v3981_v26 }
 0x2ec   : > { %4464 = vst [vmem:[#allocation12_spill] sm:$0xff] %v3983_v55  ;;  %1715 = vadd.xlane.f32.xlu1 %v3983_v55  ;;  %v3987_v11 = vpop.eup %2972 }
 0x2ed   : > { %4465 = vst [vmem:[#allocation13_spill] sm:$0xff] %v3987_v11  ;;  %v3989_v42 = vpop.eup %2974 }
 0x2ee   : > { %4466 = vst [vmem:[#allocation15_spill] sm:$0xff] %v3989_v42 }
 0x2ef   : > { %1717 = vadd.xlane.f32.xlu0 %v3987_v11 }
 0x2f0   : > { %1719 = vadd.xlane.f32.xlu1 %v3989_v42 }
 0x2fb   : > { %v1598_v58 = vpop.xlane.xlu0 %1597 }
 0x2fc   : > { %2976 = vrcp.f32 %v1598_v58 }
 0x2ff   : > { %v1600_v59 = vpop.xlane.xlu1 %1599  ;;  %v1594_v63 = vpop.xlane.xlu0 %1593 }
 0x300   : > { %2978 = vrcp.f32 %v1600_v59 }
 0x301   : > { %2980 = vrcp.f32 %v1594_v63 }
 0x303   : > { %v1596_v7 = vpop.xlane.xlu1 %1595 }
 0x304   : > { %2982 = vrcp.f32 %v1596_v7  ;;  %v1606_v31 = vpop.xlane.xlu0 %1605 }
 0x305   : > { %2984 = vrcp.f32 %v1606_v31 }
 0x306   : > { %v2977_v20 = vpop.eup %2976 }
 0x307   : > { %v1787_v5 = vmul.f32 %v2977_v20, %v3744_v51  ;;  %v1608_v38 = vpop.xlane.xlu1 %1607 }
 0x308   : > { %2986 = vrcp.f32 %v1608_v38  ;;  %v1602_v11 = vpop.xlane.xlu0 %1601 }
 0x309   : > { %v1851_v42 = vmax.f32 %v1787_v5, 1e-08  ;;  %2988 = vrcp.f32 %v1602_v11 }
 0x30a   : > { %v2979_v58 = vpop.eup %2978 }
 0x30b   : > { %v2981_v55 = vpop.eup %2980  ;;  %1916 = vst.msk [vmem:[%s3995_s8 + $0x10] sm:$0xff] %vm1913_vm2, %v1851_v42  ;;  %v1788_v59 = vmul.f32 %v2979_v58, %v3751_v0  ;;  %v1604_v63 = vpop.xlane.xlu1 %1603 }
 0x30c   : > { %v1785_v51 = vmul.f32 %v2981_v55, %v3748_v34  ;;  %2990 = vrcp.f32 %v1604_v63  ;;  %v1614_v7 = vpop.xlane.xlu0 %1613 }
 0x30d   : > { %v1852_v31 = vmax.f32 %v1788_v59, 1e-08  ;;  %2992 = vrcp.f32 %v1614_v7 }
 0x30e   : > { %v2983_v11 = vpop.eup %2982  ;;  %v1849_v20 = vmax.f32 %v1785_v51, 1e-08 }
 0x30f   : > { %v2985_v5 = vpop.eup %2984  ;;  %1917 = vst.msk [vmem:[%s3995_s8 + $0x18] sm:$0xff] %vm1913_vm2, %v1852_v31  ;;  %v1786_v38 = vmul.f32 %v2983_v11, %v3757_v12  ;;  %v1616_v26 = vpop.xlane.xlu1 %1615 }
 0x310   : > { %1914 = vst.msk [vmem:[%s3995_s8] sm:$0xff] %vm1913_vm2, %v1849_v20  ;;  %v1791_v0 = vmul.f32 %v2985_v5, %v3760_v21  ;;  %2994 = vrcp.f32 %v1616_v26  ;;  %v1610_v34 = vpop.xlane.xlu0 %1609 }
 0x311   : > { %v1850_v55 = vmax.f32 %v1786_v38, 1e-08  ;;  %2996 = vrcp.f32 %v1610_v34 }
 0x312   : > { %v2987_v42 = vpop.eup %2986  ;;  %v1855_v58 = vmax.f32 %v1791_v0, 1e-08 }
 0x313   : > { %v2989_v59 = vpop.eup %2988  ;;  %1915 = vst.msk [vmem:[%s3995_s8 + $0x8] sm:$0xff] %vm1913_vm2, %v1850_v55  ;;  %v1792_v63 = vmul.f32 %v2987_v42, %v3765_v32  ;;  %v1612_v51 = vpop.xlane.xlu1 %1611 }
 0x314   : > { %1920 = vst.msk [vmem:[%s3995_s8 + $0x30] sm:$0xff] %vm1913_vm2, %v1855_v58  ;;  %v1789_v12 = vmul.f32 %v2989_v59, %v3768_v17  ;;  %2998 = vrcp.f32 %v1612_v51  ;;  %v1622_v21 = vpop.xlane.xlu0 %1621 }
 0x315   : > { %v1856_v26 = vmax.f32 %v1792_v63, 1e-08  ;;  %3000 = vrcp.f32 %v1622_v21 }
 0x316   : > { %v2991_v7 = vpop.eup %2990  ;;  %v1853_v31 = vmax.f32 %v1789_v12, 1e-08 }
 0x317   : > { %v2993_v11 = vpop.eup %2992  ;;  %1921 = vst.msk [vmem:[%s3995_s8 + $0x38] sm:$0xff] %vm1913_vm2, %v1856_v26  ;;  %v1790_v20 = vmul.f32 %v2991_v7, %v3773_v35  ;;  %v1624_v5 = vpop.xlane.xlu1 %1623 }
 0x318   : > { %1918 = vst.msk [vmem:[%s3995_s8 + $0x20] sm:$0xff] %vm1913_vm2, %v1853_v31  ;;  %v1795_v32 = vmul.f32 %v2993_v11, %v3776_v24  ;;  %3002 = vrcp.f32 %v1624_v5  ;;  %v1618_v17 = vpop.xlane.xlu0 %1617 }
 0x319   : > { %v1854_v38 = vmax.f32 %v1790_v20, 1e-08  ;;  %3004 = vrcp.f32 %v1618_v17 }
 0x31a   : > { %v2995_v0 = vpop.eup %2994  ;;  %v1859_v34 = vmax.f32 %v1795_v32, 1e-08 }
 0x31b   : > { %v2997_v55 = vpop.eup %2996  ;;  %1919 = vst.msk [vmem:[%s3995_s8 + $0x28] sm:$0xff] %vm1913_vm2, %v1854_v38  ;;  %v1796_v42 = vmul.f32 %v2995_v0, %v3781_v41  ;;  %v1620_v58 = vpop.xlane.xlu1 %1619 }
 0x31c   : > { %1924 = vst.msk [vmem:[%s3995_s8 + $0x50] sm:$0xff] %vm1913_vm2, %v1859_v34  ;;  %v1793_v35 = vmul.f32 %v2997_v55, %v3784_v27  ;;  %3006 = vrcp.f32 %v1620_v58  ;;  %v1630_v24 = vpop.xlane.xlu0 %1629 }
 0x31d   : > { %v1860_v59 = vmax.f32 %v1796_v42, 1e-08  ;;  %3008 = vrcp.f32 %v1630_v24 }
 0x31e   : > { %v2999_v63 = vpop.eup %2998  ;;  %v1857_v51 = vmax.f32 %v1793_v35, 1e-08 }
 0x31f   : > { %v3001_v12 = vpop.eup %3000  ;;  %1925 = vst.msk [vmem:[%s3995_s8 + $0x58] sm:$0xff] %vm1913_vm2, %v1860_v59  ;;  %v1794_v21 = vmul.f32 %v2999_v63, %v3789_v44  ;;  %v1632_v26 = vpop.xlane.xlu1 %1631 }
 0x320   : > { %1922 = vst.msk [vmem:[%s3995_s8 + $0x40] sm:$0xff] %vm1913_vm2, %v1857_v51  ;;  %v1799_v41 = vmul.f32 %v3001_v12, %v3792_v45  ;;  %3010 = vrcp.f32 %v1632_v26  ;;  %v1626_v27 = vpop.xlane.xlu0 %1625 }
 0x321   : > { %v1858_v7 = vmax.f32 %v1794_v21, 1e-08  ;;  %3012 = vrcp.f32 %v1626_v27 }
 0x322   : > { %v3003_v31 = vpop.eup %3002  ;;  %v1863_v11 = vmax.f32 %v1799_v41, 1e-08 }
 0x323   : > { %v3005_v20 = vpop.eup %3004  ;;  %1923 = vst.msk [vmem:[%s3995_s8 + $0x48] sm:$0xff] %vm1913_vm2, %v1858_v7  ;;  %v1800_v5 = vmul.f32 %v3003_v31, %v3797_v49  ;;  %v1628_v32 = vpop.xlane.xlu1 %1627 }
 0x324   : > { %1928 = vst.msk [vmem:[%s3995_s8 + $0x70] sm:$0xff] %vm1913_vm2, %v1863_v11  ;;  %v1797_v44 = vmul.f32 %v3005_v20, %v3800_v37  ;;  %3014 = vrcp.f32 %v1628_v32  ;;  %v1638_v45 = vpop.xlane.xlu0 %1637 }
 0x325   : > { %v1864_v17 = vmax.f32 %v1800_v5, 1e-08  ;;  %3016 = vrcp.f32 %v1638_v45 }
 0x326   : > { %v3007_v38 = vpop.eup %3006  ;;  %v1861_v0 = vmax.f32 %v1797_v44, 1e-08 }
 0x327   : > { %v3009_v34 = vpop.eup %3008  ;;  %1929 = vst.msk [vmem:[%s3995_s8 + $0x78] sm:$0xff] %vm1913_vm2, %v1864_v17  ;;  %v1798_v55 = vmul.f32 %v3007_v38, %v3805_v52  ;;  %v1640_v42 = vpop.xlane.xlu1 %1639 }
 0x328   : > { %1926 = vst.msk [vmem:[%s3995_s8 + $0x60] sm:$0xff] %vm1913_vm2, %v1861_v0  ;;  %v1803_v49 = vmul.f32 %v3009_v34, %v3808_v61  ;;  %3018 = vrcp.f32 %v1640_v42  ;;  %v1634_v37 = vpop.xlane.xlu0 %1633 }
 0x329   : > { %v1862_v58 = vmax.f32 %v1798_v55, 1e-08  ;;  %3020 = vrcp.f32 %v1634_v37 }
 0x32a   : > { %v3011_v35 = vpop.eup %3010  ;;  %v1867_v24 = vmax.f32 %v1803_v49, 1e-08 }
 0x32b   : > { %v3013_v59 = vpop.eup %3012  ;;  %1927 = vst.msk [vmem:[%s3995_s8 + $0x68] sm:$0xff] %vm1913_vm2, %v1862_v58  ;;  %v1804_v63 = vmul.f32 %v3011_v35, %v3813_v57  ;;  %v1636_v51 = vpop.xlane.xlu1 %1635 }
 0x32c   : > { %1932 = vst.msk [vmem:[%s3995_s8 + $0x90] sm:$0xff] %vm1913_vm2, %v1867_v24  ;;  %v1801_v52 = vmul.f32 %v3013_v59, %v3816_v16  ;;  %3022 = vrcp.f32 %v1636_v51  ;;  %v1646_v61 = vpop.xlane.xlu0 %1645 }
 0x32d   : > { %v1868_v12 = vmax.f32 %v1804_v63, 1e-08  ;;  %3024 = vrcp.f32 %v1646_v61 }
 0x32e   : > { %v3015_v21 = vpop.eup %3014  ;;  %v1865_v26 = vmax.f32 %v1801_v52, 1e-08 }
 0x32f   : > { %v3017_v41 = vpop.eup %3016  ;;  %1933 = vst.msk [vmem:[%s3995_s8 + $0x98] sm:$0xff] %vm1913_vm2, %v1868_v12  ;;  %v1802_v27 = vmul.f32 %v3015_v21, %v3821_v60  ;;  %v1648_v7 = vpop.xlane.xlu1 %1647 }
 0x330   : > { %1930 = vst.msk [vmem:[%s3995_s8 + $0x80] sm:$0xff] %vm1913_vm2, %v1865_v26  ;;  %v1807_v57 = vmul.f32 %v3017_v41, %v3824_v22  ;;  %3026 = vrcp.f32 %v1648_v7  ;;  %v1642_v16 = vpop.xlane.xlu0 %1641 }
 0x331   : > { %v1866_v31 = vmax.f32 %v1802_v27, 1e-08  ;;  %3028 = vrcp.f32 %v1642_v16 }
 0x332   : > { %v3019_v11 = vpop.eup %3018  ;;  %v1871_v20 = vmax.f32 %v1807_v57, 1e-08 }
 0x333   : > { %v3021_v5 = vpop.eup %3020  ;;  %1931 = vst.msk [vmem:[%s3995_s8 + $0x88] sm:$0xff] %vm1913_vm2, %v1866_v31  ;;  %v1808_v32 = vmul.f32 %v3019_v11, %v3829_v1  ;;  %v1644_v44 = vpop.xlane.xlu1 %1643 }
 0x334   : > { %1936 = vst.msk [vmem:[%s3995_s8 + $0xb0] sm:$0xff] %vm1913_vm2, %v1871_v20  ;;  %v1805_v60 = vmul.f32 %v3021_v5, %v3832_v10  ;;  %3030 = vrcp.f32 %v1644_v44  ;;  %v1654_v22 = vpop.xlane.xlu0 %1653 }
 0x335   : > { %v1872_v45 = vmax.f32 %v1808_v32, 1e-08  ;;  %3032 = vrcp.f32 %v1654_v22 }
 0x336   : > { %v3023_v17 = vpop.eup %3022  ;;  %v1869_v38 = vmax.f32 %v1805_v60, 1e-08 }
 0x337   : > { %v3025_v0 = vpop.eup %3024  ;;  %1937 = vst.msk [vmem:[%s3995_s8 + $0xb8] sm:$0xff] %vm1913_vm2, %v1872_v45  ;;  %v1806_v34 = vmul.f32 %v3023_v17, %v3837_v4  ;;  %v1656_v55 = vpop.xlane.xlu1 %1655 }
 0x338   : > { %1934 = vst.msk [vmem:[%s3995_s8 + $0xa0] sm:$0xff] %vm1913_vm2, %v1869_v38  ;;  %v1811_v1 = vmul.f32 %v3025_v0, %v3840_v3  ;;  %3034 = vrcp.f32 %v1656_v55  ;;  %v1650_v10 = vpop.xlane.xlu0 %1649 }
 0x339   : > { %v1870_v42 = vmax.f32 %v1806_v34, 1e-08  ;;  %3036 = vrcp.f32 %v1650_v10 }
 0x33a   : > { %v3027_v49 = vpop.eup %3026  ;;  %v1875_v37 = vmax.f32 %v1811_v1, 1e-08 }
 0x33b   : > { %v3029_v58 = vpop.eup %3028  ;;  %1935 = vst.msk [vmem:[%s3995_s8 + $0xa8] sm:$0xff] %vm1913_vm2, %v1870_v42  ;;  %v1812_v35 = vmul.f32 %v3027_v49, %v3845_v9  ;;  %v1652_v24 = vpop.xlane.xlu1 %1651 }
 0x33c   : > { %1940 = vst.msk [vmem:[%s3995_s8 + $0xd0] sm:$0xff] %vm1913_vm2, %v1875_v37  ;;  %v1809_v4 = vmul.f32 %v3029_v58, %v3848_v28  ;;  %3038 = vrcp.f32 %v1652_v24  ;;  %v1662_v3 = vpop.xlane.xlu0 %1661 }
 0x33d   : > { %v1876_v59 = vmax.f32 %v1812_v35, 1e-08  ;;  %3040 = vrcp.f32 %v1662_v3 }
 0x33e   : > { %v3031_v63 = vpop.eup %3030  ;;  %v1873_v51 = vmax.f32 %v1809_v4, 1e-08 }
 0x33f   : > { %v3033_v52 = vpop.eup %3032  ;;  %1941 = vst.msk [vmem:[%s3995_s8 + $0xd8] sm:$0xff] %vm1913_vm2, %v1876_v59  ;;  %v1810_v61 = vmul.f32 %v3031_v63, %v3853_v14  ;;  %v1664_v12 = vpop.xlane.xlu1 %1663 }
 0x340   : > { %1938 = vst.msk [vmem:[%s3995_s8 + $0xc0] sm:$0xff] %vm1913_vm2, %v1873_v51  ;;  %v1815_v9 = vmul.f32 %v3033_v52, %v3856_v6  ;;  %3042 = vrcp.f32 %v1664_v12  ;;  %v1658_v28 = vpop.xlane.xlu0 %1657 }
 0x341   : > { %v1874_v21 = vmax.f32 %v1810_v61, 1e-08  ;;  %3044 = vrcp.f32 %v1658_v28 }
 0x342   : > { %v3035_v26 = vpop.eup %3034  ;;  %v1879_v41 = vmax.f32 %v1815_v9, 1e-08 }
 0x343   : > { %v3037_v27 = vpop.eup %3036  ;;  %1939 = vst.msk [vmem:[%s3995_s8 + $0xc8] sm:$0xff] %vm1913_vm2, %v1874_v21  ;;  %v1816_v7 = vmul.f32 %v3035_v26, %v3861_v23  ;;  %v1660_v57 = vpop.xlane.xlu1 %1659 }
 0x344   : > { %1944 = vst.msk [vmem:[%s3995_s8 + $0xf0] sm:$0xff] %vm1913_vm2, %v1879_v41  ;;  %v1813_v14 = vmul.f32 %v3037_v27, %v3864_v54  ;;  %3046 = vrcp.f32 %v1660_v57  ;;  %v1670_v6 = vpop.xlane.xlu0 %1669 }
 0x345   : > { %v1880_v16 = vmax.f32 %v1816_v7, 1e-08  ;;  %3048 = vrcp.f32 %v1670_v6 }
 0x346   : > { %v3039_v31 = vpop.eup %3038  ;;  %v1877_v11 = vmax.f32 %v1813_v14, 1e-08 }
 0x347   : > { %v3041_v20 = vpop.eup %3040  ;;  %1945 = vst.msk [vmem:[%s3995_s8 + $0xf8] sm:$0xff] %vm1913_vm2, %v1880_v16  ;;  %v1814_v5 = vmul.f32 %v3039_v31, %v3869_v29  ;;  %v1672_v32 = vpop.xlane.xlu1 %1671 }
 0x348   : > { %1942 = vst.msk [vmem:[%s3995_s8 + $0xe0] sm:$0xff] %vm1913_vm2, %v1877_v11  ;;  %v1819_v23 = vmul.f32 %v3041_v20, %v3872_v19  ;;  %3050 = vrcp.f32 %v1672_v32  ;;  %v1666_v54 = vpop.xlane.xlu0 %1665 }
 0x349   : > { %v1878_v44 = vmax.f32 %v1814_v5, 1e-08  ;;  %3052 = vrcp.f32 %v1666_v54 }
 0x34a   : > { %v3043_v60 = vpop.eup %3042  ;;  %v1883_v22 = vmax.f32 %v1819_v23, 1e-08 }
 0x34b   : > { %v3045_v45 = vpop.eup %3044  ;;  %1943 = vst.msk [vmem:[%s3995_s8 + $0xe8] sm:$0xff] %vm1913_vm2, %v1878_v44  ;;  %v1820_v17 = vmul.f32 %v3043_v60, %v3877_v40  ;;  %v1668_v38 = vpop.xlane.xlu1 %1667 }
 0x34c   : > { %1948 = vst.msk [vmem:[%s3995_s8 + $0x110] sm:$0xff] %vm1913_vm2, %v1883_v22  ;;  %v1817_v29 = vmul.f32 %v3045_v45, %v3880_v25  ;;  %3054 = vrcp.f32 %v1668_v38  ;;  %v1678_v19 = vpop.xlane.xlu0 %1677 }
 0x34d   : > { %v1884_v0 = vmax.f32 %v1820_v17, 1e-08  ;;  %3056 = vrcp.f32 %v1678_v19  ;;  %v4468_v17 = vld [vmem:[#allocation4_spill] sm:$0xff] }
 0x34e   : > { %v3047_v34 = vpop.eup %3046  ;;  %v1881_v55 = vmax.f32 %v1817_v29, 1e-08 }
 0x34f   : > { %v3049_v1 = vpop.eup %3048  ;;  %1949 = vst.msk [vmem:[%s3995_s8 + $0x118] sm:$0xff] %vm1913_vm2, %v1884_v0  ;;  %v1818_v10 = vmul.f32 %v3047_v34, %v3885_v46  ;;  %v1680_v42 = vpop.xlane.xlu1 %1679 }
 0x350   : > { %1946 = vst.msk [vmem:[%s3995_s8 + $0x100] sm:$0xff] %vm1913_vm2, %v1881_v55  ;;  %v1823_v40 = vmul.f32 %v3049_v1, %v3888_v30  ;;  %3058 = vrcp.f32 %v1680_v42  ;;  %v1674_v25 = vpop.xlane.xlu0 %1673  ;;  %v4470_v42 = vld [vmem:[#allocation6_spill] sm:$0xff] }
 0x351   : > { %v1882_v49 = vmax.f32 %v1818_v10, 1e-08  ;;  %3060 = vrcp.f32 %v1674_v25 }
 0x352   : > { %v3051_v37 = vpop.eup %3050  ;;  %v1887_v58 = vmax.f32 %v1823_v40, 1e-08 }
 0x353   : > { %v3053_v35 = vpop.eup %3052  ;;  %1947 = vst.msk [vmem:[%s3995_s8 + $0x108] sm:$0xff] %vm1913_vm2, %v1882_v49  ;;  %v1824_v24 = vmul.f32 %v3051_v37, %v3893_v56  ;;  %v1676_v4 = vpop.xlane.xlu1 %1675  ;;  %v4471_v49 = vld [vmem:[#allocation7_spill] sm:$0xff] }
 0x354   : > { %1952 = vst.msk [vmem:[%s3995_s8 + $0x130] sm:$0xff] %vm1913_vm2, %v1887_v58  ;;  %v1821_v46 = vmul.f32 %v3053_v35, %v3896_v15  ;;  %3062 = vrcp.f32 %v1676_v4  ;;  %v1686_v30 = vpop.xlane.xlu0 %1685 }
 0x355   : > { %v1888_v3 = vmax.f32 %v1824_v24, 1e-08  ;;  %3064 = vrcp.f32 %v1686_v30  ;;  %v4472_v30 = vld [vmem:[#allocation8_spill] sm:$0xff] }
 0x356   : > { %v3055_v59 = vpop.eup %3054  ;;  %v1885_v63 = vmax.f32 %v1821_v46, 1e-08 }
 0x357   : > { %v3057_v51 = vpop.eup %3056  ;;  %1953 = vst.msk [vmem:[%s3995_s8 + $0x138] sm:$0xff] %vm1913_vm2, %v1888_v3  ;;  %v1822_v52 = vmul.f32 %v3055_v59, %v3901_v62  ;;  %v1688_v61 = vpop.xlane.xlu1 %1687 }
 0x358   : > { %1950 = vst.msk [vmem:[%s3995_s8 + $0x120] sm:$0xff] %vm1913_vm2, %v1885_v63  ;;  %v1827_v56 = vmul.f32 %v3057_v51, %v3904_v48  ;;  %3066 = vrcp.f32 %v1688_v61  ;;  %v1682_v15 = vpop.xlane.xlu0 %1681  ;;  %v4473_v63 = vld [vmem:[#allocation9_spill] sm:$0xff] }
 0x359   : > { %v1886_v12 = vmax.f32 %v1822_v52, 1e-08  ;;  %3068 = vrcp.f32 %v1682_v15 }
 0x35a   : > { %v3059_v9 = vpop.eup %3058  ;;  %v1891_v28 = vmax.f32 %v1827_v56, 1e-08 }
 0x35b   : > { %v3061_v21 = vpop.eup %3060  ;;  %1951 = vst.msk [vmem:[%s3995_s8 + $0x128] sm:$0xff] %vm1913_vm2, %v1886_v12  ;;  %v1828_v26 = vmul.f32 %v3059_v9, %v3909_v8  ;;  %v1684_v41 = vpop.xlane.xlu1 %1683 }
 0x35c   : > { %1956 = vst.msk [vmem:[%s3995_s8 + $0x150] sm:$0xff] %vm1913_vm2, %v1891_v28  ;;  %v1825_v62 = vmul.f32 %v3061_v21, %v3912_v13  ;;  %3070 = vrcp.f32 %v1684_v41  ;;  %v1694_v48 = vpop.xlane.xlu0 %1693  ;;  %v4474_v21 = vld [vmem:[#allocation10_spill] sm:$0xff] }
 0x35d   : > { %v1892_v27 = vmax.f32 %v1828_v26, 1e-08  ;;  %3072 = vrcp.f32 %v1694_v48 }
 0x35e   : > { %v3063_v7 = vpop.eup %3062  ;;  %v1889_v57 = vmax.f32 %v1825_v62, 1e-08 }
 0x35f   : > { %v3065_v14 = vpop.eup %3064  ;;  %1957 = vst.msk [vmem:[%s3995_s8 + $0x158] sm:$0xff] %vm1913_vm2, %v1892_v27  ;;  %v1826_v6 = vmul.f32 %v3063_v7, %v3917_v18  ;;  %v1696_v16 = vpop.xlane.xlu1 %1695  ;;  %v4467_v18 = vld [vmem:[#allocation3_spill] sm:$0xff] }
 0x360   : > { %1954 = vst.msk [vmem:[%s3995_s8 + $0x140] sm:$0xff] %vm1913_vm2, %v1889_v57  ;;  %v1831_v8 = vmul.f32 %v3065_v14, %v3920_v36  ;;  %3074 = vrcp.f32 %v1696_v16  ;;  %v1690_v13 = vpop.xlane.xlu0 %1689 }
 0x361   : > { %v1890_v31 = vmax.f32 %v1826_v6, 1e-08  ;;  %3076 = vrcp.f32 %v1690_v13 }
 0x362   : > { %v3067_v11 = vpop.eup %3066  ;;  %v1895_v20 = vmax.f32 %v1831_v8, 1e-08 }
 0x363   : > { %v3069_v5 = vpop.eup %3068  ;;  %1955 = vst.msk [vmem:[%s3995_s8 + $0x148] sm:$0xff] %vm1913_vm2, %v1890_v31  ;;  %v1832_v32 = vmul.f32 %v3067_v11, %v3925_v43  ;;  %v1692_v23 = vpop.xlane.xlu1 %1691  ;;  %v4469_v43 = vld [vmem:[#allocation5_spill] sm:$0xff] }
 0x364   : > { %1960 = vst.msk [vmem:[%s3995_s8 + $0x170] sm:$0xff] %vm1913_vm2, %v1895_v20  ;;  %v1829_v54 = vmul.f32 %v3069_v5, %v4467_v18  ;;  %3078 = vrcp.f32 %v1692_v23  ;;  %v1702_v36 = vpop.xlane.xlu0 %1701 }
 0x365   : > { %v1896_v44 = vmax.f32 %v1832_v32, 1e-08  ;;  %3080 = vrcp.f32 %v1702_v36 }
 0x366   : > { %v3071_v60 = vpop.eup %3070  ;;  %v1893_v22 = vmax.f32 %v1829_v54, 1e-08  ;;  %v4475_v54 = vld [vmem:[#allocation11_spill] sm:$0xff] }
 0x367   : > { %v3073_v45 = vpop.eup %3072  ;;  %1961 = vst.msk [vmem:[%s3995_s8 + $0x178] sm:$0xff] %vm1913_vm2, %v1896_v44  ;;  %v1830_v38 = vmul.f32 %v3071_v60, %v4468_v17  ;;  %v1704_v29 = vpop.xlane.xlu1 %1703  ;;  %v4476_v44 = vld [vmem:[#allocation12_spill] sm:$0xff] }
 0x368   : > { %1958 = vst.msk [vmem:[%s3995_s8 + $0x160] sm:$0xff] %vm1913_vm2, %v1893_v22  ;;  %v1835_v19 = vmul.f32 %v3073_v45, %v4469_v43  ;;  %3082 = vrcp.f32 %v1704_v29  ;;  %v1698_v0 = vpop.xlane.xlu0 %1697  ;;  %v4478_v43 = vld [vmem:[#allocation15_spill] sm:$0xff] }
 0x369   : > { %v1894_v34 = vmax.f32 %v1830_v38, 1e-08  ;;  %3084 = vrcp.f32 %v1698_v0 }
 0x36a   : > { %v3075_v55 = vpop.eup %3074  ;;  %v1899_v1 = vmax.f32 %v1835_v19, 1e-08 }
 0x36b   : > { %v3077_v10 = vpop.eup %3076  ;;  %1959 = vst.msk [vmem:[%s3995_s8 + $0x168] sm:$0xff] %vm1913_vm2, %v1894_v34  ;;  %v1836_v40 = vmul.f32 %v3075_v55, %v4470_v42  ;;  %v1700_v25 = vpop.xlane.xlu1 %1699 }
 0x36c   : > { %1964 = vst.msk [vmem:[%s3995_s8 + $0x190] sm:$0xff] %vm1913_vm2, %v1899_v1  ;;  %v1833_v37 = vmul.f32 %v3077_v10, %v4471_v49  ;;  %3086 = vrcp.f32 %v1700_v25  ;;  %v1710_v58 = vpop.xlane.xlu0 %1709 }
 0x36d   : > { %v1900_v35 = vmax.f32 %v1836_v40, 1e-08  ;;  %3088 = vrcp.f32 %v1710_v58 }
 0x36e   : > { %v3079_v24 = vpop.eup %3078  ;;  %v1897_v4 = vmax.f32 %v1833_v37, 1e-08 }
 0x36f   : > { %v3081_v46 = vpop.eup %3080  ;;  %1965 = vst.msk [vmem:[%s3995_s8 + $0x198] sm:$0xff] %vm1913_vm2, %v1900_v35  ;;  %v1834_v3 = vmul.f32 %v3079_v24, %v4472_v30  ;;  %v1712_v59 = vpop.xlane.xlu1 %1711 }
 0x370   : > { %1962 = vst.msk [vmem:[%s3995_s8 + $0x180] sm:$0xff] %vm1913_vm2, %v1897_v4  ;;  %v1839_v51 = vmul.f32 %v3081_v46, %v4473_v63  ;;  %3090 = vrcp.f32 %v1712_v59  ;;  %v1706_v52 = vpop.xlane.xlu0 %1705 }
 0x371   : > { %v1898_v61 = vmax.f32 %v1834_v3, 1e-08  ;;  %3092 = vrcp.f32 %v1706_v52 }
 0x372   : > { %v3083_v56 = vpop.eup %3082  ;;  %v1903_v15 = vmax.f32 %v1839_v51, 1e-08 }
 0x373   : > { %v3085_v12 = vpop.eup %3084  ;;  %1963 = vst.msk [vmem:[%s3995_s8 + $0x188] sm:$0xff] %vm1913_vm2, %v1898_v61  ;;  %v1840_v9 = vmul.f32 %v3083_v56, %v3956_v53  ;;  %v1708_v28 = vpop.xlane.xlu1 %1707 }
 0x374   : > { %1968 = vst.msk [vmem:[%s3995_s8 + $0x1b0] sm:$0xff] %vm1913_vm2, %v1903_v15  ;;  %v1837_v26 = vmul.f32 %v3085_v12, %v4474_v21  ;;  %3094 = vrcp.f32 %v1708_v28 }
 0x375   : > { %v1904_v41 = vmax.f32 %v1840_v9, 1e-08 }
 0x376   : > { %v3087_v62 = vpop.eup %3086  ;;  %v1901_v48 = vmax.f32 %v1837_v26, 1e-08 }
 0x377   : > { %v3089_v27 = vpop.eup %3088  ;;  %1969 = vst.msk [vmem:[%s3995_s8 + $0x1b8] sm:$0xff] %vm1913_vm2, %v1904_v41  ;;  %v1838_v7 = vmul.f32 %v3087_v62, %v3964_v39 }
 0x378   : > { %1966 = vst.msk [vmem:[%s3995_s8 + $0x1a0] sm:$0xff] %vm1913_vm2, %v1901_v48  ;;  %v1843_v53 = vmul.f32 %v3089_v27, %v3968_v2  ;;  %v1714_v57 = vpop.xlane.xlu0 %1713 }
 0x379   : > { %v1902_v14 = vmax.f32 %v1838_v7, 1e-08  ;;  %3096 = vrcp.f32 %v1714_v57  ;;  %v1716_v6 = vpop.xlane.xlu1 %1715 }
 0x37a   : > { %v3091_v16 = vpop.eup %3090  ;;  %v1907_v8 = vmax.f32 %v1843_v53, 1e-08  ;;  %3098 = vrcp.f32 %v1716_v6 }
 0x37b   : > { %v3093_v13 = vpop.eup %3092  ;;  %1967 = vst.msk [vmem:[%s3995_s8 + $0x1a8] sm:$0xff] %vm1913_vm2, %v1902_v14  ;;  %v1844_v31 = vmul.f32 %v3091_v16, %v3972_v50 }
 0x37c   : > { %1972 = vst.msk [vmem:[%s3995_s8 + $0x1d0] sm:$0xff] %vm1913_vm2, %v1907_v8  ;;  %v1841_v39 = vmul.f32 %v3093_v13, %v3974_v33  ;;  %v1718_v2 = vpop.xlane.xlu0 %1717 }
 0x37d   : > { %v1908_v11 = vmax.f32 %v1844_v31, 1e-08  ;;  %3100 = vrcp.f32 %v1718_v2  ;;  %v1720_v20 = vpop.xlane.xlu1 %1719 }
 0x37e   : > { %v3095_v5 = vpop.eup %3094  ;;  %v1905_v32 = vmax.f32 %v1841_v39, 1e-08  ;;  %3102 = vrcp.f32 %v1720_v20 }
 0x37f   : > { %1973 = vst.msk [vmem:[%s3995_s8 + $0x1d8] sm:$0xff] %vm1913_vm2, %v1908_v11  ;;  %v1842_v23 = vmul.f32 %v3095_v5, %v3978_v47  ;;  %v4477_v47 = vld [vmem:[#allocation13_spill] sm:$0xff] }
 0x380   : > { %1970 = vst.msk [vmem:[%s3995_s8 + $0x1c0] sm:$0xff] %vm1913_vm2, %v1905_v32 }
 0x381   : > { %v1906_v50 = vmax.f32 %v1842_v23, 1e-08 }
 0x383   : > { %v3097_v18 = vpop.eup %3096  ;;  %1971 = vst.msk [vmem:[%s3995_s8 + $0x1c8] sm:$0xff] %vm1913_vm2, %v1906_v50 }
 0x384   : > { %v3099_v33 = vpop.eup %3098  ;;  %v1845_v36 = vmul.f32 %v3097_v18, %v4475_v54 }
 0x385   : > { %v1846_v60 = vmul.f32 %v3099_v33, %v4476_v44 }
 0x386   : > { %v1909_v22 = vmax.f32 %v1845_v36, 1e-08 }
 0x387   : > { %v3101_v45 = vpop.eup %3100  ;;  %v1910_v17 = vmax.f32 %v1846_v60, 1e-08  ;;  %1984 = sbr.rel (!%p3247_p4) target bundleno = 982 (0x3d6), region = 44 }
 0x388   : > { %v3103_v38 = vpop.eup %3102  ;;  %1974 = vst.msk [vmem:[%s3995_s8 + $0x1e0] sm:$0xff] %vm1913_vm2, %v1909_v22  ;;  %v1847_v29 = vmul.f32 %v3101_v45, %v4477_v47 }
 0x389   : > { %1975 = vst.msk [vmem:[%s3995_s8 + $0x1e8] sm:$0xff] %vm1913_vm2, %v1910_v17  ;;  %v1848_v19 = vmul.f32 %v3103_v38, %v4478_v43 }
 0x38a   : > { %v1911_v0 = vmax.f32 %v1847_v29, 1e-08 }
 0x38b   : > { %v1912_v34 = vmax.f32 %v1848_v19, 1e-08 }
 0x38c   : > { %1976 = vst.msk [vmem:[%s3995_s8 + $0x1f0] sm:$0xff] %vm1913_vm2, %v1911_v0 }
 0x38d   : > { %1977 = vst.msk [vmem:[%s3995_s8 + $0x1f8] sm:$0xff] %vm1913_vm2, %v1912_v34 }
 0x38e   : > { %s4488_s18 = smov (!%p1987_p8, %s1986_s18), 64 }
 0x38f   : > { %s2526_s13 = sshll.u32 %s4488_s18, 7 }
 0x390   : > { %p2529_p9 = scmp.eq.s32.totalorder %s2526_s13, 0 }
 0x391   : > { %s4201_s14 = sshrl.u32 (!%p2529_p9), %s4488_s18, 6 }
 0x392   : > { %1995 = sbr.rel (%p2529_p9) target bundleno = 982 (0x3d6), region = 48  ;;  %p2530_p10 = scmp.le.s32.totalorder (!%p2529_p9), %s4201_s14, 0 }
 0x399   : > { %2401 = sbr.rel (%p2530_p10) target bundleno = 961 (0x3c1), region = 124  ;;  %s4479_s21 = smov (!%p2530_p10), %s4195_s12 }
 0x39a   : > { %s4480_s26 = smov (!%p2530_p10), %s3995_s8  ;;  %s4210_s29 = smov (!%p2530_p10), 0  }
 0x39b   : > { %s4212_s15 = smov (!%p2530_p10), 0  }
 0x3a0 LB: >> { %v2183_v55 = vld [vmem:[%s3166_s26] sm:$0xff]  ;;  %v2185_v1 = vld [vmem:[%s3166_s26 + $0x8] sm:$0xff]  ;;  %v2187_v10 = vld [vmem:[%s3166_s26 + $0x10] sm:$0xff]  ;;  %s2311_s16 = sadd.s32 1, %s3170_s29  ;;  %s2177_s15 = sadd.s32 1, %s3174_s15   ;;  %s3174_s15 = sphi %s4212_s15, %s2177_s15   ;;  %s3170_s29 = sphi %s4210_s29, %s4483_s29   ;;  %s3166_s26 = sphi %s4480_s26, %s4482_s26   ;;  %s3162_s21 = sphi %s4479_s21, %s4481_s21  }
 0x3a1   : >> { %2184 = vst [vmem:[%s3162_s21] sm:$0xff] %v2183_v55  ;;  %2186 = vst [vmem:[%s3162_s21 + $0x8] sm:$0xff] %v2185_v1  ;;  %v2189_v42 = vld [vmem:[%s3166_s26 + $0x18] sm:$0xff]  ;;  %v2191_v40 = vld [vmem:[%s3166_s26 + $0x20] sm:$0xff]  ;;  %p2312_p11 = scmp.ge.s32.totalorder %s2311_s16, %s4201_s14  ;;  %p2176_p12 = scmp.ge.s32.totalorder %s2177_s15, %s4201_s14 }
 0x3a2   : >> { %2188 = vst [vmem:[%s3162_s21 + $0x10] sm:$0xff] %v2187_v10  ;;  %v2193_v25 = vld [vmem:[%s3166_s26 + $0x28] sm:$0xff]  ;;  %2190 = vst [vmem:[%s3162_s21 + $0x18] sm:$0xff] %v2189_v42  ;;  %v2195_v49 = vld [vmem:[%s3166_s26 + $0x30] sm:$0xff] }
 0x3a3   : >> { %2192 = vst [vmem:[%s3162_s21 + $0x20] sm:$0xff] %v2191_v40  ;;  %2194 = vst [vmem:[%s3162_s21 + $0x28] sm:$0xff] %v2193_v25  ;;  %v2197_v37 = vld [vmem:[%s3166_s26 + $0x38] sm:$0xff]  ;;  %v2199_v58 = vld [vmem:[%s3166_s26 + $0x40] sm:$0xff]  ;;  %s4490_s16 = smov (%p2312_p11, %s2311_s16), 0 }
 0x3a4   : >> { %2196 = vst [vmem:[%s3162_s21 + $0x30] sm:$0xff] %v2195_v49  ;;  %2198 = vst [vmem:[%s3162_s21 + $0x38] sm:$0xff] %v2197_v37  ;;  %v2201_v35 = vld [vmem:[%s3166_s26 + $0x48] sm:$0xff]  ;;  %v2203_v24 = vld [vmem:[%s3166_s26 + $0x50] sm:$0xff]  ;;  %s2531_s17 = sshll.u32 %s4490_s16, 9  ;;  %s4483_s29 = smov %s4490_s16 }
 0x3a5   : >> { %2200 = vst [vmem:[%s3162_s21 + $0x40] sm:$0xff] %v2199_v58  ;;  %v2205_v4 = vld [vmem:[%s3166_s26 + $0x58] sm:$0xff]  ;;  %2202 = vst [vmem:[%s3162_s21 + $0x48] sm:$0xff] %v2201_v35  ;;  %v2207_v46 = vld [vmem:[%s3166_s26 + $0x60] sm:$0xff]  ;;  %s4268_s20 = scalar_lea.vmem %s3995_s8, %s2531_s17 [#allocation2]   ;;  %s4271_s23 = scalar_lea.vmem %s4195_s12, %s2531_s17  }
 0x3a6   : >> { %2204 = vst [vmem:[%s3162_s21 + $0x50] sm:$0xff] %v2203_v24  ;;  %2206 = vst [vmem:[%s3162_s21 + $0x58] sm:$0xff] %v2205_v4  ;;  %v2209_v30 = vld [vmem:[%s3166_s26 + $0x68] sm:$0xff]  ;;  %v2211_v3 = vld [vmem:[%s3166_s26 + $0x70] sm:$0xff] }
 0x3a7   : >> { %2208 = vst [vmem:[%s3162_s21 + $0x60] sm:$0xff] %v2207_v46  ;;  %2210 = vst [vmem:[%s3162_s21 + $0x68] sm:$0xff] %v2209_v30  ;;  %v2213_v59 = vld [vmem:[%s3166_s26 + $0x78] sm:$0xff]  ;;  %v2215_v63 = vld [vmem:[%s3166_s26 + $0x80] sm:$0xff] }
 0x3a8   : >> { %2212 = vst [vmem:[%s3162_s21 + $0x70] sm:$0xff] %v2211_v3  ;;  %v2217_v51 = vld [vmem:[%s3166_s26 + $0x88] sm:$0xff]  ;;  %2214 = vst [vmem:[%s3162_s21 + $0x78] sm:$0xff] %v2213_v59  ;;  %v2219_v52 = vld [vmem:[%s3166_s26 + $0x90] sm:$0xff] }
 0x3a9   : >> { %2216 = vst [vmem:[%s3162_s21 + $0x80] sm:$0xff] %v2215_v63  ;;  %2218 = vst [vmem:[%s3162_s21 + $0x88] sm:$0xff] %v2217_v51  ;;  %v2221_v61 = vld [vmem:[%s3166_s26 + $0x98] sm:$0xff]  ;;  %v2223_v56 = vld [vmem:[%s3166_s26 + $0xa0] sm:$0xff] }
 0x3aa   : >> { %2220 = vst [vmem:[%s3162_s21 + $0x90] sm:$0xff] %v2219_v52  ;;  %2222 = vst [vmem:[%s3162_s21 + $0x98] sm:$0xff] %v2221_v61  ;;  %v2225_v15 = vld [vmem:[%s3166_s26 + $0xa8] sm:$0xff]  ;;  %v2227_v12 = vld [vmem:[%s3166_s26 + $0xb0] sm:$0xff] }
 0x3ab   : >> { %2224 = vst [vmem:[%s3162_s21 + $0xa0] sm:$0xff] %v2223_v56  ;;  %v2229_v9 = vld [vmem:[%s3166_s26 + $0xb8] sm:$0xff]  ;;  %2226 = vst [vmem:[%s3162_s21 + $0xa8] sm:$0xff] %v2225_v15  ;;  %v2231_v28 = vld [vmem:[%s3166_s26 + $0xc0] sm:$0xff] }
 0x3ac   : >> { %2228 = vst [vmem:[%s3162_s21 + $0xb0] sm:$0xff] %v2227_v12  ;;  %2230 = vst [vmem:[%s3162_s21 + $0xb8] sm:$0xff] %v2229_v9  ;;  %v2233_v21 = vld [vmem:[%s3166_s26 + $0xc8] sm:$0xff]  ;;  %v2235_v26 = vld [vmem:[%s3166_s26 + $0xd0] sm:$0xff] }
 0x3ad   : >> { %2232 = vst [vmem:[%s3162_s21 + $0xc0] sm:$0xff] %v2231_v28  ;;  %2234 = vst [vmem:[%s3162_s21 + $0xc8] sm:$0xff] %v2233_v21  ;;  %v2237_v41 = vld [vmem:[%s3166_s26 + $0xd8] sm:$0xff]  ;;  %v2239_v62 = vld [vmem:[%s3166_s26 + $0xe0] sm:$0xff] }
 0x3ae   : >> { %2236 = vst [vmem:[%s3162_s21 + $0xd0] sm:$0xff] %v2235_v26  ;;  %v2241_v48 = vld [vmem:[%s3166_s26 + $0xe8] sm:$0xff]  ;;  %2238 = vst [vmem:[%s3162_s21 + $0xd8] sm:$0xff] %v2237_v41  ;;  %v2243_v27 = vld [vmem:[%s3166_s26 + $0xf0] sm:$0xff] }
 0x3af   : >> { %2240 = vst [vmem:[%s3162_s21 + $0xe0] sm:$0xff] %v2239_v62  ;;  %2242 = vst [vmem:[%s3162_s21 + $0xe8] sm:$0xff] %v2241_v48  ;;  %v2245_v7 = vld [vmem:[%s3166_s26 + $0xf8] sm:$0xff]  ;;  %v2247_v53 = vld [vmem:[%s3166_s26 + $0x100] sm:$0xff] }
 0x3b0   : >> { %2244 = vst [vmem:[%s3162_s21 + $0xf0] sm:$0xff] %v2243_v27  ;;  %2246 = vst [vmem:[%s3162_s21 + $0xf8] sm:$0xff] %v2245_v7  ;;  %v2249_v57 = vld [vmem:[%s3166_s26 + $0x108] sm:$0xff]  ;;  %v2251_v14 = vld [vmem:[%s3166_s26 + $0x110] sm:$0xff] }
 0x3b1   : >> { %2248 = vst [vmem:[%s3162_s21 + $0x100] sm:$0xff] %v2247_v53  ;;  %v2253_v6 = vld [vmem:[%s3166_s26 + $0x118] sm:$0xff]  ;;  %2250 = vst [vmem:[%s3162_s21 + $0x108] sm:$0xff] %v2249_v57  ;;  %v2255_v16 = vld [vmem:[%s3166_s26 + $0x120] sm:$0xff] }
 0x3b2   : >> { %2252 = vst [vmem:[%s3162_s21 + $0x110] sm:$0xff] %v2251_v14  ;;  %2254 = vst [vmem:[%s3162_s21 + $0x118] sm:$0xff] %v2253_v6  ;;  %v2257_v8 = vld [vmem:[%s3166_s26 + $0x128] sm:$0xff]  ;;  %v2259_v13 = vld [vmem:[%s3166_s26 + $0x130] sm:$0xff] }
 0x3b3   : >> { %2256 = vst [vmem:[%s3162_s21 + $0x120] sm:$0xff] %v2255_v16  ;;  %2258 = vst [vmem:[%s3162_s21 + $0x128] sm:$0xff] %v2257_v8  ;;  %v2261_v31 = vld [vmem:[%s3166_s26 + $0x138] sm:$0xff]  ;;  %v2263_v39 = vld [vmem:[%s3166_s26 + $0x140] sm:$0xff] }
 0x3b4   : >> { %2260 = vst [vmem:[%s3162_s21 + $0x130] sm:$0xff] %v2259_v13  ;;  %v2265_v2 = vld [vmem:[%s3166_s26 + $0x148] sm:$0xff]  ;;  %2262 = vst [vmem:[%s3162_s21 + $0x138] sm:$0xff] %v2261_v31  ;;  %v2267_v11 = vld [vmem:[%s3166_s26 + $0x150] sm:$0xff] }
 0x3b5   : >> { %2264 = vst [vmem:[%s3162_s21 + $0x140] sm:$0xff] %v2263_v39  ;;  %2266 = vst [vmem:[%s3162_s21 + $0x148] sm:$0xff] %v2265_v2  ;;  %v2269_v20 = vld [vmem:[%s3166_s26 + $0x158] sm:$0xff]  ;;  %v2271_v5 = vld [vmem:[%s3166_s26 + $0x160] sm:$0xff] }
 0x3b6   : >> { %2268 = vst [vmem:[%s3162_s21 + $0x150] sm:$0xff] %v2267_v11  ;;  %2270 = vst [vmem:[%s3162_s21 + $0x158] sm:$0xff] %v2269_v20  ;;  %v2273_v32 = vld [vmem:[%s3166_s26 + $0x168] sm:$0xff]  ;;  %v2275_v23 = vld [vmem:[%s3166_s26 + $0x170] sm:$0xff] }
 0x3b7   : >> { %2272 = vst [vmem:[%s3162_s21 + $0x160] sm:$0xff] %v2271_v5  ;;  %v2277_v50 = vld [vmem:[%s3166_s26 + $0x178] sm:$0xff]  ;;  %2274 = vst [vmem:[%s3162_s21 + $0x168] sm:$0xff] %v2273_v32  ;;  %v2279_v18 = vld [vmem:[%s3166_s26 + $0x180] sm:$0xff] }
 0x3b8   : >> { %2276 = vst [vmem:[%s3162_s21 + $0x170] sm:$0xff] %v2275_v23  ;;  %2278 = vst [vmem:[%s3162_s21 + $0x178] sm:$0xff] %v2277_v50  ;;  %v2281_v33 = vld [vmem:[%s3166_s26 + $0x188] sm:$0xff]  ;;  %v2283_v54 = vld [vmem:[%s3166_s26 + $0x190] sm:$0xff] }
 0x3b9   : >> { %2280 = vst [vmem:[%s3162_s21 + $0x180] sm:$0xff] %v2279_v18  ;;  %2282 = vst [vmem:[%s3162_s21 + $0x188] sm:$0xff] %v2281_v33  ;;  %v2285_v36 = vld [vmem:[%s3166_s26 + $0x198] sm:$0xff]  ;;  %v2287_v44 = vld [vmem:[%s3166_s26 + $0x1a0] sm:$0xff] }
 0x3ba   : >> { %2284 = vst [vmem:[%s3162_s21 + $0x190] sm:$0xff] %v2283_v54  ;;  %v2289_v60 = vld [vmem:[%s3166_s26 + $0x1a8] sm:$0xff]  ;;  %2286 = vst [vmem:[%s3162_s21 + $0x198] sm:$0xff] %v2285_v36  ;;  %v2291_v22 = vld [vmem:[%s3166_s26 + $0x1b0] sm:$0xff]  ;;  %2179 = sbr.rel (!%p2176_p12) target bundleno = 928 (0x3a0), region = 130 }
 0x3bb   : >> { %2288 = vst [vmem:[%s3162_s21 + $0x1a0] sm:$0xff] %v2287_v44  ;;  %2290 = vst [vmem:[%s3162_s21 + $0x1a8] sm:$0xff] %v2289_v60  ;;  %v2293_v45 = vld [vmem:[%s3166_s26 + $0x1b8] sm:$0xff]  ;;  %v2295_v17 = vld [vmem:[%s3166_s26 + $0x1c0] sm:$0xff] }
 0x3bc   : >> { %2292 = vst [vmem:[%s3162_s21 + $0x1b0] sm:$0xff] %v2291_v22  ;;  %2294 = vst [vmem:[%s3162_s21 + $0x1b8] sm:$0xff] %v2293_v45  ;;  %v2297_v38 = vld [vmem:[%s3166_s26 + $0x1c8] sm:$0xff]  ;;  %v2299_v47 = vld [vmem:[%s3166_s26 + $0x1d0] sm:$0xff] }
 0x3bd   : >> { %2296 = vst [vmem:[%s3162_s21 + $0x1c0] sm:$0xff] %v2295_v17  ;;  %v2301_v29 = vld [vmem:[%s3166_s26 + $0x1d8] sm:$0xff]  ;;  %2298 = vst [vmem:[%s3162_s21 + $0x1c8] sm:$0xff] %v2297_v38  ;;  %v2303_v43 = vld [vmem:[%s3166_s26 + $0x1e0] sm:$0xff] }
 0x3be   : >> { %2300 = vst [vmem:[%s3162_s21 + $0x1d0] sm:$0xff] %v2299_v47  ;;  %2302 = vst [vmem:[%s3162_s21 + $0x1d8] sm:$0xff] %v2301_v29  ;;  %v2305_v19 = vld [vmem:[%s3166_s26 + $0x1e8] sm:$0xff]  ;;  %v2307_v0 = vld [vmem:[%s3166_s26 + $0x1f0] sm:$0xff] }
 0x3bf   : >> { %2304 = vst [vmem:[%s3162_s21 + $0x1e0] sm:$0xff] %v2303_v43  ;;  %2306 = vst [vmem:[%s3162_s21 + $0x1e8] sm:$0xff] %v2305_v19  ;;  %v2309_v34 = vld [vmem:[%s3166_s26 + $0x1f8] sm:$0xff]  ;;  %s4482_s26 = smov %s4268_s20 }
 0x3c0   : >> { %2308 = vst [vmem:[%s3162_s21 + $0x1f0] sm:$0xff] %v2307_v0  ;;  %2310 = vst [vmem:[%s3162_s21 + $0x1f8] sm:$0xff] %v2309_v34  ;;  %s4481_s21 = smov %s4271_s23 }
 0x3c1 PF: > { %s4376_s24 = sand.u32 63, %s4488_s18   ;;  %s2542_s27 = sshll.u32 %s4201_s14, 9 }
 0x3c2   : > { %s2322_s28 = scalar_lea.vmem %s3995_s8, %s2542_s27 [#allocation2]   ;;  %s2324_s30 = scalar_lea.vmem %s4195_s12, %s2542_s27  }
 0x3c3   : > { %p2536_p13 = scmp.le.s32.totalorder %s4376_s24, 0 }
 0x3c4   : > { %s3176_s6 = smov (!%p2536_p13), %s2324_s30   ;;  %s3180_s7 = smov (!%p2536_p13), %s2322_s28  }
 0x3c5   : > { %2415 = sbr.rel (%p2536_p13) target bundleno = 982 (0x3d6), region = 135  ;;  %s3184_s9 = smov (!%p2536_p13), 0  }
 0x3c6   : > { %s3188_s10 = smov (!%p2536_p13), 0  }
 0x3cc LB: >> { %v2334_v55 = vld [vmem:[%s3182_s7] sm:$0xff]  ;;  %s2336_s18 = sadd.s32 1, %s3186_s9  ;;  %s2328_s10 = sadd.s32 1, %s3190_s10   ;;  %s3190_s10 = sphi %s3188_s10, %s2328_s10   ;;  %s3186_s9 = sphi %s3184_s9, %s3185_s9   ;;  %s3182_s7 = sphi %s3180_s7, %s2341_s7   ;;  %s3178_s6 = sphi %s3176_s6, %s2342_s6  }
 0x3cd   : >> { %2335 = vst [vmem:[%s3178_s6] sm:$0xff] %v2334_v55  ;;  %p2337_p0 = scmp.ge.s32.totalorder %s2336_s18, %s4376_s24  ;;  %p2327_p1 = scmp.ge.s32.totalorder %s2328_s10, %s4376_s24 }
 0x3cf   : >> { %s4492_s18 = smov (%p2337_p0, %s2336_s18), 0  ;;  %2330 = sbr.rel (!%p2327_p1) target bundleno = 972 (0x3cc), region = 141 }
 0x3d0   : >> { %s2537_s8 = sshll.u32 %s4492_s18, 3  ;;  %s3185_s9 = smov %s4492_s18  }
 0x3d1   : >> { %s2341_s7 = scalar_lea.vmem %s2322_s28, %s2537_s8 [#allocation2]   ;;  %s2342_s6 = scalar_lea.vmem %s2324_s30, %s2537_s8  }
 0x3d6 PF: > { %p12_p2 = scmp.ge.s32.totalorder %s3237_s22, 4   ;;  %s4484_s18 = smov %s3154_s19 }
 0x3d7   : > { %s4485_s19 = smov %s3245_s25  ;;  %s4486_s20 = smov %s3237_s22 }
 0x3d8   :  { %14 = sbr.rel (!%p12_p2) target bundleno = 2 (0x2), region = 152 }

</bundles_post_ra>
